<compile_context>
chip_gen: v7x
topology: tpu7x:2x2x1
jax: 0.10.0
libtpu: 0.0.40
codegen_flags: <defaults>
</compile_context>

<pallas_src>
from functools import partial

import numpy as np
import jax
import jax.numpy as jnp
from jax.experimental import pallas as pl
from jax.experimental.pallas import tpu as pltpu


# ---------------------------------------------------------------------------
# The fused kernel (one block of BB images per grid step)
# ---------------------------------------------------------------------------
def _lenet_kernel(x_ref, m1_ref, t1_ref, m2_ref, t2_ref,
                  w1_ref, w2_ref, w3_ref, b_ref, o_ref):
    f32, bf16 = jnp.float32, jnp.bfloat16
    BB = x_ref.shape[1]                       # images per grid step (mult of 8)

    def bdot(a, b):                           # bf16 MXU inputs, f32 accumulate
        return jnp.dot(a.astype(bf16), b, preferred_element_type=f32)

    def hpool(y, rows, cols):
        # rows = pooled row count; y has 2*rows*BB rows laid out as h*BB+img,
        # so the two conv rows of each pool pair are adjacent BB-row slabs.
        y = y.reshape(rows, 2 * BB, cols)
        return jnp.maximum(y[:, 0:BB, :],
                           y[:, BB:2 * BB, :]).reshape(rows * BB, cols)

    # ---- conv1 (5x5 valid) + relu + 2x2 maxpool, all BB images in one M ----
    xa = x_ref[...].reshape(32 * BB, 96)                    # rows = h*BB + img
    acc = bdot(xa[0:28 * BB], m1_ref[0])
    for i in range(1, 5):
        acc = acc + bdot(xa[BB * i:BB * i + 28 * BB], m1_ref[i])
    y = jnp.maximum(acc + b_ref[0:1, 0:168], 0.0)           # (28*BB, 168)
    yh = hpool(y, 14, 168)                                  # (14*BB, 168)
    p1 = jnp.maximum(bdot(yh, t1_ref[0]), bdot(yh, t1_ref[1]))   # (14*BB, 84)

    # ---- conv2 (5x5 valid) + relu + 2x2 maxpool ----
    acc2 = bdot(p1[0:10 * BB], m2_ref[0])
    for i in range(1, 5):
        acc2 = acc2 + bdot(p1[BB * i:BB * i + 10 * BB], m2_ref[i])
    y2 = jnp.maximum(acc2 + b_ref[1:2, 0:160], 0.0)         # (10*BB, 160)
    y2h = hpool(y2, 5, 160)                                 # (5*BB, 160)
    p2 = jnp.maximum(bdot(y2h, t2_ref[0]), bdot(y2h, t2_ref[1]))  # (5*BB, 80)

    # ---- fc1 (NCHW flatten realized as sum over 5 spatial rows) / fc2 / fc3 --
    h = b_ref[2:3, 0:120] + bdot(p2[0:BB], w1_ref[0])
    for r in range(1, 5):
        h = h + bdot(p2[BB * r:BB * r + BB], w1_ref[r])
    h = jnp.maximum(h, 0.0)                                 # (BB, 120)
    h = jnp.maximum(bdot(h, w2_ref[...]) + b_ref[3:4, 0:84], 0.0)  # (BB, 84)
    out = bdot(h, w3_ref[...]) + b_ref[4:5, 0:128]          # (BB, 128) padded
    o_ref[...] = out.astype(o_ref.dtype)


# ---------------------------------------------------------------------------
# One-time weight packing (outside jit)
# ---------------------------------------------------------------------------
def _banded_conv(w, w_in):
    # w: (Cout, Cin, kh, kw) -> (kh, w_in*Cin, (w_in-kw+1)*Cout) band matrices:
    #   Y[h, wo*Cout+co] = sum_i (A[h+i, :] @ M[i])[wo*Cout+co]
    cout, cin, kh, kw = w.shape
    wo = w_in - kw + 1
    m = np.zeros((kh, w_in * cin, wo * cout), np.float32)
    for i in range(kh):
        wij_t = np.transpose(w[:, :, i, :], (2, 1, 0))      # (kw, Cin, Cout)
        for j in range(kw):
            for q in range(wo):
                m[i, (q + j) * cin:(q + j + 1) * cin,
                  q * cout:(q + 1) * cout] = wij_t[j]
    return m


def _pool_w_selectors(wo, c):
    qo = wo // 2
    t = np.zeros((2, wo * c, qo * c), np.float32)
    eye = np.eye(c, dtype=np.float32)
    for d in range(2):
        for q in range(qo):
            t[d, (2 * q + d) * c:(2 * q + d + 1) * c, q * c:(q + 1) * c] = eye
    return t


def prepare_params(params):
    """Pack PyTorch-layout params into kernel-ready (bf16) matrices."""
    c1w = np.asarray(params["conv1_w"], np.float32)
    c1b = np.asarray(params["conv1_b"], np.float32)
    c2w = np.asarray(params["conv2_w"], np.float32)
    c2b = np.asarray(params["conv2_b"], np.float32)
    f1w = np.asarray(params["fc1_w"], np.float32)
    f1b = np.asarray(params["fc1_b"], np.float32)
    f2w = np.asarray(params["fc2_w"], np.float32)
    f2b = np.asarray(params["fc2_b"], np.float32)
    f3w = np.asarray(params["fc3_w"], np.float32)
    f3b = np.asarray(params["fc3_b"], np.float32)

    m1 = _banded_conv(c1w, 32)                   # (5, 96, 168)
    t1 = _pool_w_selectors(28, 6)                # (2, 168, 84)
    m2 = _banded_conv(c2w, 14)                   # (5, 84, 160)
    t2 = _pool_w_selectors(10, 16)               # (2, 160, 80)

    # fc1: PyTorch flatten is (c, h, w); our activation cols are w*16+c and the
    # 5 spatial rows are summed in-kernel -> permute weight rows accordingly.
    w1 = f1w.reshape(120, 16, 5, 5).transpose(2, 3, 1, 0).reshape(5, 80, 120)
    w2 = f2w.T                                   # (120, 84)
    w3 = np.zeros((84, 128), np.float32)         # lane-dense padded fc3
    w3[:, :10] = f3w.T

    biases = np.zeros((5, 168), np.float32)      # packed f32 biases
    biases[0, :168] = np.tile(c1b, 28)
    biases[1, :160] = np.tile(c2b, 10)
    biases[2, :120] = f1b
    biases[3, :84] = f2b
    biases[4, :10] = f3b

    bf = lambda a: jnp.asarray(a, jnp.bfloat16)
    return (bf(m1), bf(t1), bf(m2), bf(t2), bf(w1), bf(w2), bf(w3),
            jnp.asarray(biases, jnp.float32))


# ---------------------------------------------------------------------------
# Forward pass (one pallas_call for the whole network)
# ---------------------------------------------------------------------------
@partial(jax.jit, static_argnames=("block_batch",))
def net_forward(x, prepped, block_batch=8):
    # x: (B, 3, 32, 32) NCHW, exactly like the PyTorch module.
    B = x.shape[0]
    BB = int(block_batch)
    assert BB % 8 == 0, "block_batch must be a multiple of 8 (sublane tile)"
    nblk = -(-B // BB)
    B_pad = nblk * BB

    # NCHW -> (32, B, 96): rows = h, middle = image (8-aligned), cols = w*3+c.
    # This layout is what lets the kernel stack all BB images into one big-M
    # LHS for every matmul with free reshapes.
    xr = jnp.transpose(x, (2, 0, 3, 1)).reshape(32, B, 96).astype(jnp.float32)
    if B_pad != B:
        xr = jnp.pad(xr, ((0, 0), (0, B_pad - B), (0, 0)))

    def const_spec(a):
        zeros = (0,) * a.ndim
        return pl.BlockSpec(a.shape, lambda b, _z=zeros: _z)

    out = pl.pallas_call(
        _lenet_kernel,
        out_shape=jax.ShapeDtypeStruct((B_pad, 128), jnp.float32),
        grid=(nblk,),
        in_specs=[pl.BlockSpec((32, BB, 96), lambda b: (0, b, 0))]
                 + [const_spec(a) for a in prepped],
        out_specs=pl.BlockSpec((BB, 128), lambda b: (b, 0)),
        compiler_params=pltpu.CompilerParams(
            dimension_semantics=("parallel",)),
    )(xr, *prepped)
    return out[:B, :10]


# ---------------------------------------------------------------------------
# Deterministic PyTorch-like init (weights kept in torch layout)
# ---------------------------------------------------------------------------
def init_params(key):
    def u(k, shape, fan_in):
        bound = 1.0 / float(np.sqrt(fan_in))
        return jax.random.uniform(k, shape, jnp.float32, -bound, bound)

    ks = jax.random.split(key, 10)
    return {
        "conv1_w": u(ks[0], (6, 3, 5, 5), 3 * 5 * 5),
        "conv1_b": u(ks[1], (6,), 3 * 5 * 5),
        "conv2_w": u(ks[2], (16, 6, 5, 5), 6 * 5 * 5),
        "conv2_b": u(ks[3], (16,), 6 * 5 * 5),
        "fc1_w": u(ks[4], (120, 400), 400),
        "fc1_b": u(ks[5], (120,), 400),
        "fc2_w": u(ks[6], (84, 120), 120),
        "fc2_b": u(ks[7], (84,), 120),
        "fc3_w": u(ks[8], (10, 84), 84),
        "fc3_b": u(ks[9], (10,), 84),
    }


# ---------------------------------------------------------------------------
# Pure-JAX reference (numerical sanity check)
# ---------------------------------------------------------------------------
def _reference_forward(x, params):
    hp = jax.lax.Precision.HIGHEST

    def conv(x, w, b):
        y = jax.lax.conv_general_dilated(
            x, w, (1, 1), "VALID",
            dimension_numbers=("NCHW", "OIHW", "NCHW"), precision=hp)
        return y + b[None, :, None, None]

    def pool(x):
        return jax.lax.reduce_window(x, -jnp.inf, jax.lax.max,
                                     (1, 1, 2, 2), (1, 1, 2, 2), "VALID")

    x = pool(jax.nn.relu(conv(x, params["conv1_w"], params["conv1_b"])))
    x = pool(jax.nn.relu(conv(x, params["conv2_w"], params["conv2_b"])))
    x = x.reshape(x.shape[0], -1)
    x = jax.nn.relu(jnp.dot(x, params["fc1_w"].T, precision=hp) + params["fc1_b"])
    x = jax.nn.relu(jnp.dot(x, params["fc2_w"].T, precision=hp) + params["fc2_b"])
    return jnp.dot(x, params["fc3_w"].T, precision=hp) + params["fc3_b"]


if __name__ == "__main__":
    key = jax.random.PRNGKey(0)
    kx, kp = jax.random.split(key)
    # Architecture requires 3x32x32 spatial input (16*5*5 flatten).
    x = jax.random.normal(kx, (2, 3, 32, 32), jnp.float32)
    params = init_params(kp)
    prepped = prepare_params(params)

    out = net_forward(x, prepped, block_batch=8)
    out = jax.block_until_ready(out)
    assert out.shape == (2, 10), out.shape

    ref = _reference_forward(x, params)
    max_err = float(jnp.max(jnp.abs(out - ref)))
    # bf16 MXU inputs -> 2e-2 tolerance (errors measured ~1e-3 at these scales).
    assert jnp.allclose(out, ref, rtol=2e-2, atol=2e-2), f"max_err={max_err}"

    print("KERNEL_OK")
</pallas_src>

<mosaic_0001>
module attributes {stable_mosaic.version = 11 : i64} {
  func.func @_lenet_kernel(%arg0: i32, %arg1: memref<32x8x96xf32, #tpu.memory_space<vmem>>, %arg2: memref<5x96x168xbf16, #tpu.memory_space<vmem>>, %arg3: memref<2x168x84xbf16, #tpu.memory_space<vmem>>, %arg4: memref<5x84x160xbf16, #tpu.memory_space<vmem>>, %arg5: memref<2x160x80xbf16, #tpu.memory_space<vmem>>, %arg6: memref<5x80x120xbf16, #tpu.memory_space<vmem>>, %arg7: memref<120x84xbf16, #tpu.memory_space<vmem>>, %arg8: memref<84x128xbf16, #tpu.memory_space<vmem>>, %arg9: memref<5x168xf32, #tpu.memory_space<vmem>>, %arg10: memref<8x128xf32, #tpu.memory_space<vmem>>) attributes {dimension_semantics = [#tpu.dimension_semantics<parallel>], iteration_bounds = array<i64: 1>, scalar_prefetch = 0 : i64, scratch_operands = 0 : i64, tpu.core_type = #tpu.core_type<tc>, window_params = [{transform_indices = @transform_0, window_bounds = array<i64: 32, 8, 96>}, {pipeline_mode = #tpu.pipeline_mode<synchronous>, transform_indices = @transform_1, window_bounds = array<i64: 5, 96, 168>}, {pipeline_mode = #tpu.pipeline_mode<synchronous>, transform_indices = @transform_2, window_bounds = array<i64: 2, 168, 84>}, {pipeline_mode = #tpu.pipeline_mode<synchronous>, transform_indices = @transform_3, window_bounds = array<i64: 5, 84, 160>}, {pipeline_mode = #tpu.pipeline_mode<synchronous>, transform_indices = @transform_4, window_bounds = array<i64: 2, 160, 80>}, {pipeline_mode = #tpu.pipeline_mode<synchronous>, transform_indices = @transform_5, window_bounds = array<i64: 5, 80, 120>}, {pipeline_mode = #tpu.pipeline_mode<synchronous>, transform_indices = @transform_6, window_bounds = array<i64: 120, 84>}, {pipeline_mode = #tpu.pipeline_mode<synchronous>, transform_indices = @transform_7, window_bounds = array<i64: 84, 128>}, {pipeline_mode = #tpu.pipeline_mode<synchronous>, transform_indices = @transform_8, window_bounds = array<i64: 5, 168>}, {transform_indices = @transform_9, window_bounds = array<i64: 8, 128>}]} {
    %c0 = arith.constant 0 : index
    %c0_0 = arith.constant 0 : index
    %c0_1 = arith.constant 0 : index
    %0 = vector.load %arg1[%c0, %c0_0, %c0_1] : memref<32x8x96xf32, #tpu.memory_space<vmem>>, vector<32x8x96xf32>
    %1 = vector.shape_cast %0 : vector<32x8x96xf32> to vector<256x96xf32>
    %2 = vector.extract_strided_slice %1 {offsets = [0, 0], sizes = [224, 96], strides = [1, 1]} : vector<256x96xf32> to vector<224x96xf32>
    %c0_2 = arith.constant 0 : index
    %c0_3 = arith.constant 0 : index
    %c0_4 = arith.constant 0 : index
    %3 = vector.load %arg2[%c0_2, %c0_3, %c0_4] : memref<5x96x168xbf16, #tpu.memory_space<vmem>>, vector<1x96x168xbf16>
    %4 = vector.shape_cast %3 : vector<1x96x168xbf16> to vector<96x168xbf16>
    %5 = arith.truncf %2 : vector<224x96xf32> to vector<224x96xbf16>
    %cst = arith.constant dense<0.000000e+00> : vector<224x168xf32>
    %6 = tpu.matmul %5, %4, %cst {dimension_numbers = #tpu.dot_dimension_numbers<[1], [0], [0], [1], [0, 0, 1, 1], [], []>} : vector<224x96xbf16>, vector<96x168xbf16>, vector<224x168xf32> -> vector<224x168xf32>
    %7 = vector.extract_strided_slice %1 {offsets = [8, 0], sizes = [224, 96], strides = [1, 1]} : vector<256x96xf32> to vector<224x96xf32>
    %c1 = arith.constant 1 : index
    %c0_5 = arith.constant 0 : index
    %c0_6 = arith.constant 0 : index
    %8 = vector.load %arg2[%c1, %c0_5, %c0_6] : memref<5x96x168xbf16, #tpu.memory_space<vmem>>, vector<1x96x168xbf16>
    %9 = vector.shape_cast %8 : vector<1x96x168xbf16> to vector<96x168xbf16>
    %10 = arith.truncf %7 : vector<224x96xf32> to vector<224x96xbf16>
    %cst_7 = arith.constant dense<0.000000e+00> : vector<224x168xf32>
    %11 = tpu.matmul %10, %9, %cst_7 {dimension_numbers = #tpu.dot_dimension_numbers<[1], [0], [0], [1], [0, 0, 1, 1], [], []>} : vector<224x96xbf16>, vector<96x168xbf16>, vector<224x168xf32> -> vector<224x168xf32>
    %12 = arith.addf %6, %11 : vector<224x168xf32>
    %13 = vector.extract_strided_slice %1 {offsets = [16, 0], sizes = [224, 96], strides = [1, 1]} : vector<256x96xf32> to vector<224x96xf32>
    %c2 = arith.constant 2 : index
    %c0_8 = arith.constant 0 : index
    %c0_9 = arith.constant 0 : index
    %14 = vector.load %arg2[%c2, %c0_8, %c0_9] : memref<5x96x168xbf16, #tpu.memory_space<vmem>>, vector<1x96x168xbf16>
    %15 = vector.shape_cast %14 : vector<1x96x168xbf16> to vector<96x168xbf16>
    %16 = arith.truncf %13 : vector<224x96xf32> to vector<224x96xbf16>
    %cst_10 = arith.constant dense<0.000000e+00> : vector<224x168xf32>
    %17 = tpu.matmul %16, %15, %cst_10 {dimension_numbers = #tpu.dot_dimension_numbers<[1], [0], [0], [1], [0, 0, 1, 1], [], []>} : vector<224x96xbf16>, vector<96x168xbf16>, vector<224x168xf32> -> vector<224x168xf32>
    %18 = arith.addf %12, %17 : vector<224x168xf32>
    %19 = vector.extract_strided_slice %1 {offsets = [24, 0], sizes = [224, 96], strides = [1, 1]} : vector<256x96xf32> to vector<224x96xf32>
    %c3 = arith.constant 3 : index
    %c0_11 = arith.constant 0 : index
    %c0_12 = arith.constant 0 : index
    %20 = vector.load %arg2[%c3, %c0_11, %c0_12] : memref<5x96x168xbf16, #tpu.memory_space<vmem>>, vector<1x96x168xbf16>
    %21 = vector.shape_cast %20 : vector<1x96x168xbf16> to vector<96x168xbf16>
    %22 = arith.truncf %19 : vector<224x96xf32> to vector<224x96xbf16>
    %cst_13 = arith.constant dense<0.000000e+00> : vector<224x168xf32>
    %23 = tpu.matmul %22, %21, %cst_13 {dimension_numbers = #tpu.dot_dimension_numbers<[1], [0], [0], [1], [0, 0, 1, 1], [], []>} : vector<224x96xbf16>, vector<96x168xbf16>, vector<224x168xf32> -> vector<224x168xf32>
    %24 = arith.addf %18, %23 : vector<224x168xf32>
    %25 = vector.extract_strided_slice %1 {offsets = [32, 0], sizes = [224, 96], strides = [1, 1]} : vector<256x96xf32> to vector<224x96xf32>
    %c4 = arith.constant 4 : index
    %c0_14 = arith.constant 0 : index
    %c0_15 = arith.constant 0 : index
    %26 = vector.load %arg2[%c4, %c0_14, %c0_15] : memref<5x96x168xbf16, #tpu.memory_space<vmem>>, vector<1x96x168xbf16>
    %27 = vector.shape_cast %26 : vector<1x96x168xbf16> to vector<96x168xbf16>
    %28 = arith.truncf %25 : vector<224x96xf32> to vector<224x96xbf16>
    %cst_16 = arith.constant dense<0.000000e+00> : vector<224x168xf32>
    %29 = tpu.matmul %28, %27, %cst_16 {dimension_numbers = #tpu.dot_dimension_numbers<[1], [0], [0], [1], [0, 0, 1, 1], [], []>} : vector<224x96xbf16>, vector<96x168xbf16>, vector<224x168xf32> -> vector<224x168xf32>
    %30 = arith.addf %24, %29 : vector<224x168xf32>
    %c0_17 = arith.constant 0 : index
    %c0_18 = arith.constant 0 : index
    %31 = vector.load %arg9[%c0_17, %c0_18] : memref<5x168xf32, #tpu.memory_space<vmem>>, vector<1x168xf32>
    %32 = vector.broadcast %31 : vector<1x168xf32> to vector<224x168xf32>
    %33 = arith.addf %30, %32 : vector<224x168xf32>
    %cst_19 = arith.constant 0.000000e+00 : f32
    %34 = vector.broadcast %cst_19 : f32 to vector<224x168xf32>
    %35 = arith.maximumf %33, %34 : vector<224x168xf32>
    %36 = vector.shape_cast %35 : vector<224x168xf32> to vector<14x16x168xf32>
    %37 = vector.extract_strided_slice %36 {offsets = [0, 0, 0], sizes = [14, 8, 168], strides = [1, 1, 1]} : vector<14x16x168xf32> to vector<14x8x168xf32>
    %38 = vector.extract_strided_slice %36 {offsets = [0, 8, 0], sizes = [14, 8, 168], strides = [1, 1, 1]} : vector<14x16x168xf32> to vector<14x8x168xf32>
    %39 = arith.maximumf %37, %38 : vector<14x8x168xf32>
    %40 = vector.shape_cast %39 : vector<14x8x168xf32> to vector<112x168xf32>
    %c0_20 = arith.constant 0 : index
    %c0_21 = arith.constant 0 : index
    %c0_22 = arith.constant 0 : index
    %41 = vector.load %arg3[%c0_20, %c0_21, %c0_22] : memref<2x168x84xbf16, #tpu.memory_space<vmem>>, vector<1x168x84xbf16>
    %42 = vector.shape_cast %41 : vector<1x168x84xbf16> to vector<168x84xbf16>
    %43 = arith.truncf %40 : vector<112x168xf32> to vector<112x168xbf16>
    %cst_23 = arith.constant dense<0.000000e+00> : vector<112x84xf32>
    %44 = tpu.matmul %43, %42, %cst_23 {dimension_numbers = #tpu.dot_dimension_numbers<[1], [0], [0], [1], [0, 0, 1, 1], [], []>} : vector<112x168xbf16>, vector<168x84xbf16>, vector<112x84xf32> -> vector<112x84xf32>
    %c1_24 = arith.constant 1 : index
    %c0_25 = arith.constant 0 : index
    %c0_26 = arith.constant 0 : index
    %45 = vector.load %arg3[%c1_24, %c0_25, %c0_26] : memref<2x168x84xbf16, #tpu.memory_space<vmem>>, vector<1x168x84xbf16>
    %46 = vector.shape_cast %45 : vector<1x168x84xbf16> to vector<168x84xbf16>
    %47 = arith.truncf %40 : vector<112x168xf32> to vector<112x168xbf16>
    %cst_27 = arith.constant dense<0.000000e+00> : vector<112x84xf32>
    %48 = tpu.matmul %47, %46, %cst_27 {dimension_numbers = #tpu.dot_dimension_numbers<[1], [0], [0], [1], [0, 0, 1, 1], [], []>} : vector<112x168xbf16>, vector<168x84xbf16>, vector<112x84xf32> -> vector<112x84xf32>
    %49 = arith.maximumf %44, %48 : vector<112x84xf32>
    %50 = vector.extract_strided_slice %49 {offsets = [0, 0], sizes = [80, 84], strides = [1, 1]} : vector<112x84xf32> to vector<80x84xf32>
    %c0_28 = arith.constant 0 : index
    %c0_29 = arith.constant 0 : index
    %c0_30 = arith.constant 0 : index
    %51 = vector.load %arg4[%c0_28, %c0_29, %c0_30] : memref<5x84x160xbf16, #tpu.memory_space<vmem>>, vector<1x84x160xbf16>
    %52 = vector.shape_cast %51 : vector<1x84x160xbf16> to vector<84x160xbf16>
    %53 = arith.truncf %50 : vector<80x84xf32> to vector<80x84xbf16>
    %cst_31 = arith.constant dense<0.000000e+00> : vector<80x160xf32>
    %54 = tpu.matmul %53, %52, %cst_31 {dimension_numbers = #tpu.dot_dimension_numbers<[1], [0], [0], [1], [0, 0, 1, 1], [], []>} : vector<80x84xbf16>, vector<84x160xbf16>, vector<80x160xf32> -> vector<80x160xf32>
    %55 = vector.extract_strided_slice %49 {offsets = [8, 0], sizes = [80, 84], strides = [1, 1]} : vector<112x84xf32> to vector<80x84xf32>
    %c1_32 = arith.constant 1 : index
    %c0_33 = arith.constant 0 : index
    %c0_34 = arith.constant 0 : index
    %56 = vector.load %arg4[%c1_32, %c0_33, %c0_34] : memref<5x84x160xbf16, #tpu.memory_space<vmem>>, vector<1x84x160xbf16>
    %57 = vector.shape_cast %56 : vector<1x84x160xbf16> to vector<84x160xbf16>
    %58 = arith.truncf %55 : vector<80x84xf32> to vector<80x84xbf16>
    %cst_35 = arith.constant dense<0.000000e+00> : vector<80x160xf32>
    %59 = tpu.matmul %58, %57, %cst_35 {dimension_numbers = #tpu.dot_dimension_numbers<[1], [0], [0], [1], [0, 0, 1, 1], [], []>} : vector<80x84xbf16>, vector<84x160xbf16>, vector<80x160xf32> -> vector<80x160xf32>
    %60 = arith.addf %54, %59 : vector<80x160xf32>
    %61 = vector.extract_strided_slice %49 {offsets = [16, 0], sizes = [80, 84], strides = [1, 1]} : vector<112x84xf32> to vector<80x84xf32>
    %c2_36 = arith.constant 2 : index
    %c0_37 = arith.constant 0 : index
    %c0_38 = arith.constant 0 : index
    %62 = vector.load %arg4[%c2_36, %c0_37, %c0_38] : memref<5x84x160xbf16, #tpu.memory_space<vmem>>, vector<1x84x160xbf16>
    %63 = vector.shape_cast %62 : vector<1x84x160xbf16> to vector<84x160xbf16>
    %64 = arith.truncf %61 : vector<80x84xf32> to vector<80x84xbf16>
    %cst_39 = arith.constant dense<0.000000e+00> : vector<80x160xf32>
    %65 = tpu.matmul %64, %63, %cst_39 {dimension_numbers = #tpu.dot_dimension_numbers<[1], [0], [0], [1], [0, 0, 1, 1], [], []>} : vector<80x84xbf16>, vector<84x160xbf16>, vector<80x160xf32> -> vector<80x160xf32>
    %66 = arith.addf %60, %65 : vector<80x160xf32>
    %67 = vector.extract_strided_slice %49 {offsets = [24, 0], sizes = [80, 84], strides = [1, 1]} : vector<112x84xf32> to vector<80x84xf32>
    %c3_40 = arith.constant 3 : index
    %c0_41 = arith.constant 0 : index
    %c0_42 = arith.constant 0 : index
    %68 = vector.load %arg4[%c3_40, %c0_41, %c0_42] : memref<5x84x160xbf16, #tpu.memory_space<vmem>>, vector<1x84x160xbf16>
    %69 = vector.shape_cast %68 : vector<1x84x160xbf16> to vector<84x160xbf16>
    %70 = arith.truncf %67 : vector<80x84xf32> to vector<80x84xbf16>
    %cst_43 = arith.constant dense<0.000000e+00> : vector<80x160xf32>
    %71 = tpu.matmul %70, %69, %cst_43 {dimension_numbers = #tpu.dot_dimension_numbers<[1], [0], [0], [1], [0, 0, 1, 1], [], []>} : vector<80x84xbf16>, vector<84x160xbf16>, vector<80x160xf32> -> vector<80x160xf32>
    %72 = arith.addf %66, %71 : vector<80x160xf32>
    %73 = vector.extract_strided_slice %49 {offsets = [32, 0], sizes = [80, 84], strides = [1, 1]} : vector<112x84xf32> to vector<80x84xf32>
    %c4_44 = arith.constant 4 : index
    %c0_45 = arith.constant 0 : index
    %c0_46 = arith.constant 0 : index
    %74 = vector.load %arg4[%c4_44, %c0_45, %c0_46] : memref<5x84x160xbf16, #tpu.memory_space<vmem>>, vector<1x84x160xbf16>
    %75 = vector.shape_cast %74 : vector<1x84x160xbf16> to vector<84x160xbf16>
    %76 = arith.truncf %73 : vector<80x84xf32> to vector<80x84xbf16>
    %cst_47 = arith.constant dense<0.000000e+00> : vector<80x160xf32>
    %77 = tpu.matmul %76, %75, %cst_47 {dimension_numbers = #tpu.dot_dimension_numbers<[1], [0], [0], [1], [0, 0, 1, 1], [], []>} : vector<80x84xbf16>, vector<84x160xbf16>, vector<80x160xf32> -> vector<80x160xf32>
    %78 = arith.addf %72, %77 : vector<80x160xf32>
    %c1_48 = arith.constant 1 : index
    %c0_49 = arith.constant 0 : index
    %79 = vector.load %arg9[%c1_48, %c0_49] : memref<5x168xf32, #tpu.memory_space<vmem>>, vector<1x160xf32>
    %80 = vector.broadcast %79 : vector<1x160xf32> to vector<80x160xf32>
    %81 = arith.addf %78, %80 : vector<80x160xf32>
    %cst_50 = arith.constant 0.000000e+00 : f32
    %82 = vector.broadcast %cst_50 : f32 to vector<80x160xf32>
    %83 = arith.maximumf %81, %82 : vector<80x160xf32>
    %84 = vector.shape_cast %83 : vector<80x160xf32> to vector<5x16x160xf32>
    %85 = vector.extract_strided_slice %84 {offsets = [0, 0, 0], sizes = [5, 8, 160], strides = [1, 1, 1]} : vector<5x16x160xf32> to vector<5x8x160xf32>
    %86 = vector.extract_strided_slice %84 {offsets = [0, 8, 0], sizes = [5, 8, 160], strides = [1, 1, 1]} : vector<5x16x160xf32> to vector<5x8x160xf32>
    %87 = arith.maximumf %85, %86 : vector<5x8x160xf32>
    %88 = vector.shape_cast %87 : vector<5x8x160xf32> to vector<40x160xf32>
    %c0_51 = arith.constant 0 : index
    %c0_52 = arith.constant 0 : index
    %c0_53 = arith.constant 0 : index
    %89 = vector.load %arg5[%c0_51, %c0_52, %c0_53] : memref<2x160x80xbf16, #tpu.memory_space<vmem>>, vector<1x160x80xbf16>
    %90 = vector.shape_cast %89 : vector<1x160x80xbf16> to vector<160x80xbf16>
    %91 = arith.truncf %88 : vector<40x160xf32> to vector<40x160xbf16>
    %cst_54 = arith.constant dense<0.000000e+00> : vector<40x80xf32>
    %92 = tpu.matmul %91, %90, %cst_54 {dimension_numbers = #tpu.dot_dimension_numbers<[1], [0], [0], [1], [0, 0, 1, 1], [], []>} : vector<40x160xbf16>, vector<160x80xbf16>, vector<40x80xf32> -> vector<40x80xf32>
    %c1_55 = arith.constant 1 : index
    %c0_56 = arith.constant 0 : index
    %c0_57 = arith.constant 0 : index
    %93 = vector.load %arg5[%c1_55, %c0_56, %c0_57] : memref<2x160x80xbf16, #tpu.memory_space<vmem>>, vector<1x160x80xbf16>
    %94 = vector.shape_cast %93 : vector<1x160x80xbf16> to vector<160x80xbf16>
    %95 = arith.truncf %88 : vector<40x160xf32> to vector<40x160xbf16>
    %cst_58 = arith.constant dense<0.000000e+00> : vector<40x80xf32>
    %96 = tpu.matmul %95, %94, %cst_58 {dimension_numbers = #tpu.dot_dimension_numbers<[1], [0], [0], [1], [0, 0, 1, 1], [], []>} : vector<40x160xbf16>, vector<160x80xbf16>, vector<40x80xf32> -> vector<40x80xf32>
    %97 = arith.maximumf %92, %96 : vector<40x80xf32>
    %c2_59 = arith.constant 2 : index
    %c0_60 = arith.constant 0 : index
    %98 = vector.load %arg9[%c2_59, %c0_60] : memref<5x168xf32, #tpu.memory_space<vmem>>, vector<1x120xf32>
    %99 = vector.extract_strided_slice %97 {offsets = [0, 0], sizes = [8, 80], strides = [1, 1]} : vector<40x80xf32> to vector<8x80xf32>
    %c0_61 = arith.constant 0 : index
    %c0_62 = arith.constant 0 : index
    %c0_63 = arith.constant 0 : index
    %100 = vector.load %arg6[%c0_61, %c0_62, %c0_63] : memref<5x80x120xbf16, #tpu.memory_space<vmem>>, vector<1x80x120xbf16>
    %101 = vector.shape_cast %100 : vector<1x80x120xbf16> to vector<80x120xbf16>
    %102 = arith.truncf %99 : vector<8x80xf32> to vector<8x80xbf16>
    %cst_64 = arith.constant dense<0.000000e+00> : vector<8x120xf32>
    %103 = tpu.matmul %102, %101, %cst_64 {dimension_numbers = #tpu.dot_dimension_numbers<[1], [0], [0], [1], [0, 0, 1, 1], [], []>} : vector<8x80xbf16>, vector<80x120xbf16>, vector<8x120xf32> -> vector<8x120xf32>
    %104 = vector.broadcast %98 : vector<1x120xf32> to vector<8x120xf32>
    %105 = arith.addf %104, %103 : vector<8x120xf32>
    %106 = vector.extract_strided_slice %97 {offsets = [8, 0], sizes = [8, 80], strides = [1, 1]} : vector<40x80xf32> to vector<8x80xf32>
    %c1_65 = arith.constant 1 : index
    %c0_66 = arith.constant 0 : index
    %c0_67 = arith.constant 0 : index
    %107 = vector.load %arg6[%c1_65, %c0_66, %c0_67] : memref<5x80x120xbf16, #tpu.memory_space<vmem>>, vector<1x80x120xbf16>
    %108 = vector.shape_cast %107 : vector<1x80x120xbf16> to vector<80x120xbf16>
    %109 = arith.truncf %106 : vector<8x80xf32> to vector<8x80xbf16>
    %cst_68 = arith.constant dense<0.000000e+00> : vector<8x120xf32>
    %110 = tpu.matmul %109, %108, %cst_68 {dimension_numbers = #tpu.dot_dimension_numbers<[1], [0], [0], [1], [0, 0, 1, 1], [], []>} : vector<8x80xbf16>, vector<80x120xbf16>, vector<8x120xf32> -> vector<8x120xf32>
    %111 = arith.addf %105, %110 : vector<8x120xf32>
    %112 = vector.extract_strided_slice %97 {offsets = [16, 0], sizes = [8, 80], strides = [1, 1]} : vector<40x80xf32> to vector<8x80xf32>
    %c2_69 = arith.constant 2 : index
    %c0_70 = arith.constant 0 : index
    %c0_71 = arith.constant 0 : index
    %113 = vector.load %arg6[%c2_69, %c0_70, %c0_71] : memref<5x80x120xbf16, #tpu.memory_space<vmem>>, vector<1x80x120xbf16>
    %114 = vector.shape_cast %113 : vector<1x80x120xbf16> to vector<80x120xbf16>
    %115 = arith.truncf %112 : vector<8x80xf32> to vector<8x80xbf16>
    %cst_72 = arith.constant dense<0.000000e+00> : vector<8x120xf32>
    %116 = tpu.matmul %115, %114, %cst_72 {dimension_numbers = #tpu.dot_dimension_numbers<[1], [0], [0], [1], [0, 0, 1, 1], [], []>} : vector<8x80xbf16>, vector<80x120xbf16>, vector<8x120xf32> -> vector<8x120xf32>
    %117 = arith.addf %111, %116 : vector<8x120xf32>
    %118 = vector.extract_strided_slice %97 {offsets = [24, 0], sizes = [8, 80], strides = [1, 1]} : vector<40x80xf32> to vector<8x80xf32>
    %c3_73 = arith.constant 3 : index
    %c0_74 = arith.constant 0 : index
    %c0_75 = arith.constant 0 : index
    %119 = vector.load %arg6[%c3_73, %c0_74, %c0_75] : memref<5x80x120xbf16, #tpu.memory_space<vmem>>, vector<1x80x120xbf16>
    %120 = vector.shape_cast %119 : vector<1x80x120xbf16> to vector<80x120xbf16>
    %121 = arith.truncf %118 : vector<8x80xf32> to vector<8x80xbf16>
    %cst_76 = arith.constant dense<0.000000e+00> : vector<8x120xf32>
    %122 = tpu.matmul %121, %120, %cst_76 {dimension_numbers = #tpu.dot_dimension_numbers<[1], [0], [0], [1], [0, 0, 1, 1], [], []>} : vector<8x80xbf16>, vector<80x120xbf16>, vector<8x120xf32> -> vector<8x120xf32>
    %123 = arith.addf %117, %122 : vector<8x120xf32>
    %124 = vector.extract_strided_slice %97 {offsets = [32, 0], sizes = [8, 80], strides = [1, 1]} : vector<40x80xf32> to vector<8x80xf32>
    %c4_77 = arith.constant 4 : index
    %c0_78 = arith.constant 0 : index
    %c0_79 = arith.constant 0 : index
    %125 = vector.load %arg6[%c4_77, %c0_78, %c0_79] : memref<5x80x120xbf16, #tpu.memory_space<vmem>>, vector<1x80x120xbf16>
    %126 = vector.shape_cast %125 : vector<1x80x120xbf16> to vector<80x120xbf16>
    %127 = arith.truncf %124 : vector<8x80xf32> to vector<8x80xbf16>
    %cst_80 = arith.constant dense<0.000000e+00> : vector<8x120xf32>
    %128 = tpu.matmul %127, %126, %cst_80 {dimension_numbers = #tpu.dot_dimension_numbers<[1], [0], [0], [1], [0, 0, 1, 1], [], []>} : vector<8x80xbf16>, vector<80x120xbf16>, vector<8x120xf32> -> vector<8x120xf32>
    %129 = arith.addf %123, %128 : vector<8x120xf32>
    %cst_81 = arith.constant 0.000000e+00 : f32
    %130 = vector.broadcast %cst_81 : f32 to vector<8x120xf32>
    %131 = arith.maximumf %129, %130 : vector<8x120xf32>
    %c0_82 = arith.constant 0 : index
    %c0_83 = arith.constant 0 : index
    %132 = vector.load %arg7[%c0_82, %c0_83] : memref<120x84xbf16, #tpu.memory_space<vmem>>, vector<120x84xbf16>
    %133 = arith.truncf %131 : vector<8x120xf32> to vector<8x120xbf16>
    %cst_84 = arith.constant dense<0.000000e+00> : vector<8x84xf32>
    %134 = tpu.matmul %133, %132, %cst_84 {dimension_numbers = #tpu.dot_dimension_numbers<[1], [0], [0], [1], [0, 0, 1, 1], [], []>} : vector<8x120xbf16>, vector<120x84xbf16>, vector<8x84xf32> -> vector<8x84xf32>
    %c3_85 = arith.constant 3 : index
    %c0_86 = arith.constant 0 : index
    %135 = vector.load %arg9[%c3_85, %c0_86] : memref<5x168xf32, #tpu.memory_space<vmem>>, vector<1x84xf32>
    %136 = vector.broadcast %135 : vector<1x84xf32> to vector<8x84xf32>
    %137 = arith.addf %134, %136 : vector<8x84xf32>
    %cst_87 = arith.constant 0.000000e+00 : f32
    %138 = vector.broadcast %cst_87 : f32 to vector<8x84xf32>
    %139 = arith.maximumf %137, %138 : vector<8x84xf32>
    %c0_88 = arith.constant 0 : index
    %c0_89 = arith.constant 0 : index
    %140 = vector.load %arg8[%c0_88, %c0_89] : memref<84x128xbf16, #tpu.memory_space<vmem>>, vector<84x128xbf16>
    %141 = arith.truncf %139 : vector<8x84xf32> to vector<8x84xbf16>
    %cst_90 = arith.constant dense<0.000000e+00> : vector<8x128xf32>
    %142 = tpu.matmul %141, %140, %cst_90 {dimension_numbers = #tpu.dot_dimension_numbers<[1], [0], [0], [1], [0, 0, 1, 1], [], []>} : vector<8x84xbf16>, vector<84x128xbf16>, vector<8x128xf32> -> vector<8x128xf32>
    %c4_91 = arith.constant 4 : index
    %c0_92 = arith.constant 0 : index
    %143 = vector.load %arg9[%c4_91, %c0_92] : memref<5x168xf32, #tpu.memory_space<vmem>>, vector<1x128xf32>
    %144 = vector.broadcast %143 : vector<1x128xf32> to vector<8x128xf32>
    %145 = arith.addf %142, %144 : vector<8x128xf32>
    %c0_93 = arith.constant 0 : index
    %c0_94 = arith.constant 0 : index
    %146 = vector.load %arg10[%c0_93, %c0_94] : memref<8x128xf32, #tpu.memory_space<vmem>>, vector<8x128xf32>
    tpu.vector_store %arg10[%c0_93, %c0_94], %145 {strides = array<i32>} : memref<8x128xf32, #tpu.memory_space<vmem>>, vector<8x128xf32>,
    return
  }
  func.func @transform_0(%arg0: i32) -> (i32, i32, i32) {
    %c0_i32 = arith.constant 0 : i32
    %c0_i32_0 = arith.constant 0 : i32
    %c0_i32_1 = arith.constant 0 : i32
    return %c0_i32, %arg0, %c0_i32_0 : i32, i32, i32
  }
  func.func @transform_1(%arg0: i32) -> (i32, i32, i32) {
    %c0_i32 = arith.constant 0 : i32
    %c0_i32_0 = arith.constant 0 : i32
    %c0_i32_1 = arith.constant 0 : i32
    %c0_i32_2 = arith.constant 0 : i32
    return %c0_i32, %c0_i32_0, %c0_i32_1 : i32, i32, i32
  }
  func.func @transform_2(%arg0: i32) -> (i32, i32, i32) {
    %c0_i32 = arith.constant 0 : i32
    %c0_i32_0 = arith.constant 0 : i32
    %c0_i32_1 = arith.constant 0 : i32
    %c0_i32_2 = arith.constant 0 : i32
    return %c0_i32, %c0_i32_0, %c0_i32_1 : i32, i32, i32
  }
  func.func @transform_3(%arg0: i32) -> (i32, i32, i32) {
    %c0_i32 = arith.constant 0 : i32
    %c0_i32_0 = arith.constant 0 : i32
    %c0_i32_1 = arith.constant 0 : i32
    %c0_i32_2 = arith.constant 0 : i32
    return %c0_i32, %c0_i32_0, %c0_i32_1 : i32, i32, i32
  }
  func.func @transform_4(%arg0: i32) -> (i32, i32, i32) {
    %c0_i32 = arith.constant 0 : i32
    %c0_i32_0 = arith.constant 0 : i32
    %c0_i32_1 = arith.constant 0 : i32
    %c0_i32_2 = arith.constant 0 : i32
    return %c0_i32, %c0_i32_0, %c0_i32_1 : i32, i32, i32
  }
  func.func @transform_5(%arg0: i32) -> (i32, i32, i32) {
    %c0_i32 = arith.constant 0 : i32
    %c0_i32_0 = arith.constant 0 : i32
    %c0_i32_1 = arith.constant 0 : i32
    %c0_i32_2 = arith.constant 0 : i32
    return %c0_i32, %c0_i32_0, %c0_i32_1 : i32, i32, i32
  }
  func.func @transform_6(%arg0: i32) -> (i32, i32) {
    %c0_i32 = arith.constant 0 : i32
    %c0_i32_0 = arith.constant 0 : i32
    %c0_i32_1 = arith.constant 0 : i32
    return %c0_i32, %c0_i32_0 : i32, i32
  }
  func.func @transform_7(%arg0: i32) -> (i32, i32) {
    %c0_i32 = arith.constant 0 : i32
    %c0_i32_0 = arith.constant 0 : i32
    %c0_i32_1 = arith.constant 0 : i32
    return %c0_i32, %c0_i32_0 : i32, i32
  }
  func.func @transform_8(%arg0: i32) -> (i32, i32) {
    %c0_i32 = arith.constant 0 : i32
    %c0_i32_0 = arith.constant 0 : i32
    %c0_i32_1 = arith.constant 0 : i32
    return %c0_i32, %c0_i32_0 : i32, i32
  }
  func.func @transform_9(%arg0: i32) -> (i32, i32) {
    %c0_i32 = arith.constant 0 : i32
    %c0_i32_0 = arith.constant 0 : i32
    return %arg0, %c0_i32 : i32, i32
  }
}

</mosaic_0001>

<bundles_post_ra>
// kernel: net_forward.1
= control target key start
LH: loop header
LB: loop body
LE: loop exit
PB: predicated region body
PF: predicated region fallthrough
CT: control target
= control target key end

     0   :  { %v5266_v1 = vmov 0   ;;  %vm178_vm0 = vcmask 785408   ;;  %vm1859_vm1 = vcmask 1043456   ;;  %vm1837_vm2 = vcmask 326656   ;;  %s6723_s1 = inlined_call_operand.vmem [shape: bf16[5,96,168], index: 1, kind: input, shape index: {}]   ;;  %s6724_s0 = inlined_call_operand.vmem [shape: f32[32,8,96], index: 0, kind: input, shape index: {}]   ;;  %s6725_s2 = inlined_call_operand.vmem [shape: bf16[2,168,84], index: 2, kind: input, shape index: {}]   ;;  %s6726_s8 = inlined_call_operand.vmem [shape: f32[5,168], index: 8, kind: input, shape index: {}]   ;;  %s6727_s3 = inlined_call_operand.vmem [shape: bf16[5,84,160], index: 3, kind: input, shape index: {}]   ;;  %s6728_s4 = inlined_call_operand.vmem [shape: bf16[2,160,80], index: 4, kind: input, shape index: {}]   ;;  %s6729_s5 = inlined_call_operand.vmem [shape: bf16[5,80,120], index: 5, kind: input, shape index: {}]   ;;  %s6730_s6 = inlined_call_operand.vmem [shape: bf16[120,84], index: 6, kind: input, shape index: {}]   ;;  %s6731_s7 = inlined_call_operand.vmem [shape: bf16[84,128], index: 7, kind: input, shape index: {}]   ;;  %s6732_s9 = inlined_call_operand.vmem [shape: f32[8,128], index: 9, kind: output, shape index: {}]  }
   0x1   :  { %v5010_v0 = vld [vmem:[%s6723_s1 + $0x64] ss:$8 sps:$4 sm:$0xff]   ;;  %253 = vmatprep.mubr.bf16.mxu0 %v5266_v1  ;;  %1863 = vmatprep.subr.bf16.mxu1 %v5266_v1  ;;  %v5012_v2 = vld [vmem:[%s6723_s1 + $0x60] ss:$8 sps:$4 sm:$0xff]   ;;  %v5013_v3 = vld [vmem:[%s6723_s1 + $0x74] ss:$8 sps:$4 sm:$0xff]  }
   0x2   :  { %221 = vmatprep.subr.bf16.mxu0 %v5010_v0  ;;  %v5015_v4 = vld [vmem:[%s6723_s1 + $0x70] ss:$8 sps:$4 sm:$0xff]   ;;  %v5016_v5 = vld [vmem:[%s6723_s1 + $0x84] ss:$8 sps:$4 sm:$0xff]   ;;  %v5018_v6 = vld [vmem:[%s6723_s1 + $0x80] ss:$8 sps:$4 sm:$0xff]  }
   0x3   :  { %222 = vmatpush1.bf16.msra.mxu0 %v5012_v2  ;;  %v5019_v7 = vld [vmem:[%s6723_s1 + $0x94] ss:$8 sps:$4 sm:$0xff]   ;;  %v5021_v10 = vld [vmem:[%s6723_s1 + $0x90] ss:$8 sps:$4 sm:$0xff]   ;;  %v5022_v12 = vld [vmem:[%s6723_s1 + $0xa4] ss:$8 sps:$4 sm:$0xff]  }
   0x4   :  { %223 = vmatprep.subr.bf16.mxu0 %v5013_v3  ;;  %v35_v8 = vld [vmem:[%s6724_s0 + $0x10] sm:$0xff]  ;;  %v36_v9 = vld [vmem:[%s6724_s0 + $0x18] sm:$0xff]  ;;  %v5024_v13 = vld [vmem:[%s6723_s1 + $0xa0] ss:$8 sps:$4 sm:$0xff]   ;;  %vm2247_vm3 = vcmask 1041408   ;;  %vm2231_vm4 = vcmask 687104  }
   0x5   :  { %v5351_v11 = vpack.c.bf16 %v36_v9, %v35_v8  ;;  %v5025_v14 = vld [vmem:[%s6723_s1 + $0xb4] ss:$8 sps:$4 sm:$0xff]   ;;  %v37_v15 = vld [vmem:[%s6724_s0 + $0x20] sm:$0xff]  ;;  %v38_v16 = vld [vmem:[%s6724_s0 + $0x28] sm:$0xff]  ;;  %vm3185_vm5 = vcmask 261120   ;;  %vm5268_vm6 = vmmov 0  }
   0x6   :  { %v5027_v17 = vld [vmem:[%s6723_s1 + $0xb0] ss:$8 sps:$4 sm:$0xff]   ;;  %v5374_v18 = vld [vmem:[%s6724_s0 + $0x8] sm:$0xff]  ;;  %v5376_v19 = vpack.c.bf16 %v38_v16, %v37_v15  ;;  %v5033_v23 = vld [vmem:[%s6723_s1 + $0x14] ss:$8 sps:$4 sm:$0xff]   ;;  %v5407_v30 = vpack.c.bf16 %v37_v15, %v36_v9  ;;  %vm3435_vm7 = vcmask 654336  }
   0x7   :  { %224 = vmatpush1.bf16.msra.mxu0 %v5015_v4  ;;  %v5030_v20 = vld [vmem:[%s6723_s1 + $0x4] ss:$8 sps:$4 sm:$0xff]   ;;  %v104_v21 = vpack.c.bf16 %v35_v8, %v5374_v18  ;;  %v5028_v22 = vld [vmem:[%s6723_s1] ss:$8 sps:$4 sm:$0xff]   ;;  %v39_v24 = vld [vmem:[%s6724_s0 + $0x30] sm:$0xff]  ;;  %vm3887_vm8 = vcmask 982016  }
   0x8   :  { %225 = vmatprep.subr.bf16.mxu0 %v5016_v5  ;;  %v40_v25 = vld [vmem:[%s6724_s0 + $0x38] sm:$0xff]  ;;  %v5036_v28 = vld [vmem:[%s6723_s1 + $0x24] ss:$8 sps:$4 sm:$0xff]   ;;  %v5034_v29 = vld [vmem:[%s6723_s1 + $0x20] ss:$8 sps:$4 sm:$0xff]   ;;  %v5429_v37 = vpack.c.bf16 %v39_v24, %v38_v16 }
   0x9   :  { %v5031_v26 = vld [vmem:[%s6723_s1 + $0x10] ss:$8 sps:$4 sm:$0xff]   ;;  %v5399_v27 = vpack.c.bf16 %v40_v25, %v39_v24  ;;  %v5039_v31 = vld [vmem:[%s6723_s1 + $0x34] ss:$8 sps:$4 sm:$0xff]   ;;  %v41_v32 = vld [vmem:[%s6724_s0 + $0x40] sm:$0xff] }
   0xa   :  { %v42_v33 = vld [vmem:[%s6724_s0 + $0x48] sm:$0xff]  ;;  %v5037_v34 = vld [vmem:[%s6723_s1 + $0x30] ss:$8 sps:$4 sm:$0xff]   ;;  %v5045_v39 = vld [vmem:[%s6723_s1 + $0x54] ss:$8 sps:$4 sm:$0xff]   ;;  %v5454_v45 = vpack.c.bf16 %v41_v32, %v40_v25 }
   0xb   :  { %226 = vmatpush1.bf16.msra.mxu0 %v5018_v6  ;;  %v5042_v35 = vld [vmem:[%s6723_s1 + $0x44] ss:$8 sps:$4 sm:$0xff]   ;;  %v5427_v36 = vpack.c.bf16 %v42_v33, %v41_v32  ;;  %v5040_v38 = vld [vmem:[%s6723_s1 + $0x40] ss:$8 sps:$4 sm:$0xff]   ;;  %v43_v40 = vld [vmem:[%s6724_s0 + $0x50] sm:$0xff] }
   0xc   :  { %227 = vmatprep.subr.bf16.mxu0 %v5019_v7  ;;  %v44_v41 = vld [vmem:[%s6724_s0 + $0x58] sm:$0xff]  ;;  %v5048_v44 = vld [vmem:[%s6723_s1 + $0xc4] ss:$8 sps:$4 sm:$0xff]   ;;  %v5467_v49 = vpack.c.bf16 %v43_v40, %v42_v33  ;;  %v47_v50 = vld [vmem:[%s6724_s0 + $0x70] sm:$0xff] }
   0xd   :  { %v5043_v42 = vld [vmem:[%s6723_s1 + $0x50] ss:$8 sps:$4 sm:$0xff]   ;;  %v5449_v43 = vpack.c.bf16 %v44_v41, %v43_v40  ;;  %v45_v46 = vld [vmem:[%s6724_s0 + $0x60] sm:$0xff]  ;;  %v46_v47 = vld [vmem:[%s6724_s0 + $0x68] sm:$0xff] }
   0xe   :  { %v5465_v48 = vpack.c.bf16 %v46_v47, %v45_v46  ;;  %v48_v51 = vld [vmem:[%s6724_s0 + $0x78] sm:$0xff]  ;;  %v5480_v53 = vpack.c.bf16 %v45_v46, %v44_v41  ;;  %v49_v54 = vld [vmem:[%s6724_s0 + $0x80] sm:$0xff]  ;;  %v50_v55 = vld [vmem:[%s6724_s0 + $0x88] sm:$0xff]  ;;  %v5493_v57 = vpack.c.bf16 %v47_v50, %v46_v47 }
   0xf   :  { %228 = vmatpush1.bf16.msra.mxu0 %v5021_v10  ;;  %v5478_v52 = vpack.c.bf16 %v48_v51, %v47_v50  ;;  %v5491_v56 = vpack.c.bf16 %v50_v55, %v49_v54  ;;  %v51_v58 = vld [vmem:[%s6724_s0 + $0x90] sm:$0xff]  ;;  %v52_v59 = vld [vmem:[%s6724_s0 + $0x98] sm:$0xff]  ;;  %v5506_v61 = vpack.c.bf16 %v49_v54, %v48_v51  ;;  %v53_v62 = vld [vmem:[%s6724_s0 + $0xa0] sm:$0xff] }
  0x10   :  { %229 = vmatprep.subr.bf16.mxu0 %v5022_v12  ;;  %v5504_v60 = vpack.c.bf16 %v52_v59, %v51_v58  ;;  %v54_v63 = vld [vmem:[%s6724_s0 + $0xa8] sm:$0xff]  ;;  %v5519_v2 = vpack.c.bf16 %v51_v58, %v50_v55  ;;  %v5524_v3 = vpack.c.bf16 %v53_v62, %v52_v59  ;;  %v5532_v4 = vld [vmem:[%s6724_s0 + $0xb0] sm:$0xff]  ;;  %v5543_v6 = vld [vmem:[%s6724_s0 + $0xb8] sm:$0xff] }
  0x11   :  { %v5517_v0 = vpack.c.bf16 %v54_v63, %v53_v62  ;;  %v5535_v5 = vpack.c.bf16 %v5532_v4, %v54_v63  ;;  %v5548_v7 = vld [vmem:[%s6724_s0 + $0xc0] sm:$0xff]  ;;  %v58_v9 = vld [vmem:[%s6724_s0 + $0xc8] sm:$0xff]  ;;  %v5563_v10 = vld [vmem:[%s6724_s0 + $0xd0] sm:$0xff]  ;;  %v5659_v33 = vpack.c.bf16 %v5543_v6, %v5532_v4 }
  0x12   :  { %v5552_v8 = vpack.c.bf16 %v5548_v7, %v5543_v6  ;;  %v5566_v12 = vpack.c.bf16 %v5563_v10, %v58_v9  ;;  %v33_v16 = vld [vmem:[%s6724_s0] sm:$0xff]  ;;  %v5057_v24 = vld [vmem:[%s6723_s1 + $0xf4] ss:$8 sps:$4 sm:$0xff]   ;;  %v5055_v25 = vld [vmem:[%s6723_s1 + $0xf0] ss:$8 sps:$4 sm:$0xff]  }
  0x13   :  { %230 = vmatpush1.bf16.msra.mxu0 %v5024_v13  ;;  %v60_v13 = vld [vmem:[%s6724_s0 + $0xd8] sm:$0xff]  ;;  %v5066_v32 = vld [vmem:[%s6723_s1 + $0x124] ss:$8 sps:$4 sm:$0xff]   ;;  %v5076_v47 = vld [vmem:[%s6723_s1 + $0x160] ss:$8 sps:$4 sm:$0xff]  }
  0x14   :  { %231 = vmatprep.subr.bf16.mxu0 %v5025_v14  ;;  %v5577_v14 = vld [vmem:[%s6724_s0 + $0xe0] sm:$0xff]  ;;  %v5067_v40 = vld [vmem:[%s6723_s1 + $0x130] ss:$8 sps:$4 sm:$0xff]   ;;  %v5081_v50 = vld [vmem:[%s6723_s1 + $0x174] ss:$8 sps:$4 sm:$0xff]  }
  0x15   :  { %v5580_v15 = vpack.c.bf16 %v5577_v14, %v60_v13  ;;  %v5072_v41 = vld [vmem:[%s6723_s1 + $0x144] ss:$8 sps:$4 sm:$0xff]   ;;  %v5079_v51 = vld [vmem:[%s6723_s1 + $0x170] ss:$8 sps:$4 sm:$0xff]   ;;  %v5082_v59 = vld [vmem:[%s6723_s1 + $0x180] ss:$8 sps:$4 sm:$0xff]  }
  0x16   :  { %v5078_v46 = vld [vmem:[%s6723_s1 + $0x164] ss:$8 sps:$4 sm:$0xff]   ;;  %v5087_v62 = vld [vmem:[%s6723_s1 + $0x194] ss:$8 sps:$4 sm:$0xff]   ;;  %v5085_v63 = vld [vmem:[%s6723_s1 + $0x190] ss:$8 sps:$4 sm:$0xff]  }
  0x17   :  { %232 = vmatpush1.bf16.msra.mxu0 %v5027_v17  ;;  %v77_v17 = vpack.c.bf16 %v5374_v18, %v33_v16  ;;  %v5054_v18 = vld [vmem:[%s6723_s1 + $0xe4] ss:$8 sps:$4 sm:$0xff]   ;;  %v5088_v6 = vld [vmem:[%s6723_s1 + $0x1a0] ss:$8 sps:$4 sm:$0xff]  }
  0x18   :  { %496 = vmatprep.subr.bf16.mxu0 %v5030_v20  ;;  %v5046_v20 = vld [vmem:[%s6723_s1 + $0xc0] ss:$8 sps:$4 sm:$0xff]   ;;  %v5084_v54 = vld [vmem:[%s6723_s1 + $0x184] ss:$8 sps:$4 sm:$0xff]  }
  0x19   :  { %v5754_v55 = vld [vmem:[%s6724_s0 + $0xe8] sm:$0xff] }
  0x1a   :  { %4056 = vmatmul.mubr.msk.bf16.vlgmr.msra.gmra.mrb[0].mxu0 %vm178_vm0, %v104_v21  ;;  %v5051_v21 = vld [vmem:[%s6723_s1 + $0xd4] ss:$8 sps:$4 sm:$0xff]   ;;  %v5758_v58 = vpack.c.bf16 %v5754_v55, %v5577_v14  ;;  %v5090_v4 = vld [vmem:[%s6723_s1 + $0x1a4] ss:$8 sps:$4 sm:$0xff]  }
  0x1b   :  { %497 = vmatpush1.bf16.msra.mxu0 %v5028_v22  ;;  %263 = vmatprep.mubr.bf16.mxu0 %v5266_v1  ;;  %v5049_v22 = vld [vmem:[%s6723_s1 + $0xd0] ss:$8 sps:$4 sm:$0xff]   ;;  %v1587_v14 = vld [vmem:[%s6726_s8] ss:$8 sm:$0x3] }
  0x1c   :  { %498 = vmatprep.subr.bf16.mxu0 %v5033_v23  ;;  %v5052_v23 = vld [vmem:[%s6723_s1 + $0xe0] ss:$8 sps:$4 sm:$0xff]  }
  0x1f   :  { %499 = vmatpush1.bf16.msra.mxu0 %v5031_v26  ;;  %v5060_v26 = vld [vmem:[%s6723_s1 + $0x104] ss:$8 sps:$4 sm:$0xff]  }
  0x20   :  { %500 = vmatprep.subr.bf16.mxu0 %v5036_v28  ;;  %v5058_v28 = vld [vmem:[%s6723_s1 + $0x100] ss:$8 sps:$4 sm:$0xff]  }
  0x22   :  { %4057 = vmatmul.mubr.msk.bf16.gmra.mrb[4].mxu0 %vm178_vm0, %v5407_v30 }
  0x23   :  { %273 = vmatprep.mubr.bf16.mxu0 %v5266_v1  ;;  %501 = vmatpush1.bf16.msra.mxu0 %v5034_v29  ;;  %v5063_v29 = vld [vmem:[%s6723_s1 + $0x114] ss:$8 sps:$4 sm:$0xff]  }
  0x24   :  { %502 = vmatprep.subr.bf16.mxu0 %v5039_v31  ;;  %v5061_v31 = vld [vmem:[%s6723_s1 + $0x110] ss:$8 sps:$4 sm:$0xff]  }
  0x27   :  { %503 = vmatpush1.bf16.msra.mxu0 %v5037_v34  ;;  %v5665_v34 = vpack.c.bf16 %v58_v9, %v5548_v7  ;;  %v5091_v7 = vld [vmem:[%s6723_s1 + $0x1b0] ss:$8 sps:$4 sm:$0xff]   ;;  %v5096_v9 = vld [vmem:[%s6723_s1 + $0x1c4] ss:$8 sps:$4 sm:$0xff]  }
  0x28   :  { %504 = vmatprep.subr.bf16.mxu0 %v5042_v35  ;;  %v5671_v35 = vpack.c.bf16 %v60_v13, %v5563_v10  ;;  %v5094_v10 = vld [vmem:[%s6723_s1 + $0x1c0] ss:$8 sps:$4 sm:$0xff]   ;;  %v5097_v13 = vld [vmem:[%s6723_s1 + $0x1d0] ss:$8 sps:$4 sm:$0xff]  }
  0x2a   :  { %4058 = vmatmul.mubr.msk.bf16.gmra.mrb[8].mxu0 %vm178_vm0, %v5429_v37 }
  0x2b   :  { %283 = vmatprep.mubr.bf16.mxu0 %v5266_v1  ;;  %505 = vmatpush1.bf16.msra.mxu0 %v5040_v38  ;;  %v5064_v38 = vld [vmem:[%s6723_s1 + $0x120] ss:$8 sps:$4 sm:$0xff]  }
  0x2c   :  { %506 = vmatprep.subr.bf16.mxu0 %v5045_v39  ;;  %v5069_v39 = vld [vmem:[%s6723_s1 + $0x134] ss:$8 sps:$4 sm:$0xff]  }
  0x2f   :  { %507 = vmatpush1.bf16.msra.mxu0 %v5043_v42  ;;  %v5070_v42 = vld [vmem:[%s6723_s1 + $0x140] ss:$8 sps:$4 sm:$0xff]  }
  0x30   :  { %746 = vmatprep.subr.bf16.mxu0 %v5048_v44  ;;  %v5073_v44 = vld [vmem:[%s6723_s1 + $0x150] ss:$8 sps:$4 sm:$0xff]  }
  0x32   :  { %4059 = vmatmul.mubr.msk.bf16.gmra.mrb[12].mxu0 %vm178_vm0, %v5454_v45 }
  0x33   :  { %293 = vmatprep.mubr.bf16.mxu0 %v5266_v1 }
  0x3a   :  { %4060 = vmatmul.mubr.msk.bf16.gmra.mrb[16].mxu0 %vm178_vm0, %v5467_v49 }
  0x3b   :  { %303 = vmatprep.mubr.bf16.mxu0 %v5266_v1 }
  0x42   :  { %4061 = vmatmul.mubr.msk.bf16.gmra.mrb[20].mxu0 %vm178_vm0, %v5480_v53 }
  0x43   :  { %313 = vmatprep.mubr.bf16.mxu0 %v5266_v1 }
  0x4a   :  { %4062 = vmatmul.mubr.msk.bf16.gmra.mrb[24].mxu0 %vm178_vm0, %v5493_v57 }
  0x4b   :  { %323 = vmatprep.mubr.bf16.mxu0 %v5266_v1 }
  0x52   :  { %4063 = vmatmul.mubr.msk.bf16.gmra.mrb[28].mxu0 %vm178_vm0, %v5506_v61 }
  0x53   :  { %333 = vmatprep.mubr.bf16.mxu0 %v5266_v1 }
  0x5a   :  { %4064 = vmatmul.mubr.msk.bf16.gmra.mrb[32].mxu0 %vm178_vm0, %v5519_v2 }
  0x5b   :  { %343 = vmatprep.mubr.bf16.mxu0 %v5266_v1 }
  0x62   :  { %4065 = vmatmul.mubr.msk.bf16.gmra.mrb[36].mxu0 %vm178_vm0, %v5524_v3 }
  0x63   :  { %353 = vmatprep.mubr.bf16.mxu0 %v5266_v1 }
  0x6a   :  { %4066 = vmatmul.mubr.msk.bf16.gmra.mrb[40].mxu0 %vm178_vm0, %v5535_v5 }
  0x6b   :  { %363 = vmatprep.mubr.bf16.mxu0 %v5266_v1 }
  0x72   :  { %4067 = vmatmul.mubr.msk.bf16.gmra.mrb[44].mxu0 %vm178_vm0, %v5552_v8 }
  0x73   :  { %373 = vmatprep.mubr.bf16.mxu0 %v5266_v1 }
  0x7a   :  { %4068 = vmatmul.mubr.msk.bf16.gmra.mrb[48].mxu0 %vm178_vm0, %v5566_v12 }
  0x7b   :  { %383 = vmatprep.mubr.bf16.mxu0 %v5266_v1 }
  0x82   :  { %4069 = vmatmul.mubr.msk.bf16.gmra.mrb[52].mxu0 %vm178_vm0, %v5580_v15 }
  0x83   :  { %528 = vmatprep.mubr.bf16.mxu0 %v5266_v1 }
  0x8a   :  { %4082 = vmatmul.mubr.msk.bf16.vlgmr.msra.gmra.mrb[0].mxu0 %vm178_vm0, %v77_v17 }
  0x8b   :  { %747 = vmatpush1.bf16.msra.mxu0 %v5046_v20  ;;  %538 = vmatprep.mubr.bf16.mxu0 %v5266_v1 }
  0x8c   :  { %748 = vmatprep.subr.bf16.mxu0 %v5051_v21 }
  0x8f   :  { %749 = vmatpush1.bf16.msra.mxu0 %v5049_v22 }
  0x90   :  { %750 = vmatprep.subr.bf16.mxu0 %v5054_v18 }
  0x92   :  { %4083 = vmatmul.mubr.msk.bf16.gmra.mrb[4].mxu0 %vm178_vm0, %v5351_v11 }
  0x93   :  { %548 = vmatprep.mubr.bf16.mxu0 %v5266_v1  ;;  %751 = vmatpush1.bf16.msra.mxu0 %v5052_v23 }
  0x94   :  { %752 = vmatprep.subr.bf16.mxu0 %v5057_v24 }
  0x97   :  { %753 = vmatpush1.bf16.msra.mxu0 %v5055_v25 }
  0x98   :  { %754 = vmatprep.subr.bf16.mxu0 %v5060_v26 }
  0x9a   :  { %4084 = vmatmul.mubr.msk.bf16.gmra.mrb[8].mxu0 %vm178_vm0, %v5376_v19 }
  0x9b   :  { %558 = vmatprep.mubr.bf16.mxu0 %v5266_v1  ;;  %755 = vmatpush1.bf16.msra.mxu0 %v5058_v28 }
  0x9c   :  { %756 = vmatprep.subr.bf16.mxu0 %v5063_v29 }
  0x9f   :  { %757 = vmatpush1.bf16.msra.mxu0 %v5061_v31 }
  0xa0   :  { %1052 = vmatprep.subr.bf16.mxu0 %v5066_v32 }
  0xa2   :  { %4085 = vmatmul.mubr.msk.bf16.gmra.mrb[12].mxu0 %vm178_vm0, %v5399_v27 }
  0xa3   :  { %568 = vmatprep.mubr.bf16.mxu0 %v5266_v1 }
  0xaa   :  { %4086 = vmatmul.mubr.msk.bf16.gmra.mrb[16].mxu0 %vm178_vm0, %v5427_v36 }
  0xab   :  { %578 = vmatprep.mubr.bf16.mxu0 %v5266_v1 }
  0xb2   :  { %4087 = vmatmul.mubr.msk.bf16.gmra.mrb[20].mxu0 %vm178_vm0, %v5449_v43 }
  0xb3   :  { %588 = vmatprep.mubr.bf16.mxu0 %v5266_v1 }
  0xba   :  { %4088 = vmatmul.mubr.msk.bf16.gmra.mrb[24].mxu0 %vm178_vm0, %v5465_v48 }
  0xbb   :  { %598 = vmatprep.mubr.bf16.mxu0 %v5266_v1 }
  0xc2   :  { %4089 = vmatmul.mubr.msk.bf16.gmra.mrb[28].mxu0 %vm178_vm0, %v5478_v52 }
  0xc3   :  { %608 = vmatprep.mubr.bf16.mxu0 %v5266_v1 }
  0xca   :  { %4090 = vmatmul.mubr.msk.bf16.gmra.mrb[32].mxu0 %vm178_vm0, %v5491_v56 }
  0xcb   :  { %618 = vmatprep.mubr.bf16.mxu0 %v5266_v1 }
  0xd2   :  { %4091 = vmatmul.mubr.msk.bf16.gmra.mrb[36].mxu0 %vm178_vm0, %v5504_v60 }
  0xd3   :  { %628 = vmatprep.mubr.bf16.mxu0 %v5266_v1 }
  0xda   :  { %4092 = vmatmul.mubr.msk.bf16.gmra.mrb[40].mxu0 %vm178_vm0, %v5517_v0 }
  0xdb   :  { %638 = vmatprep.mubr.bf16.mxu0 %v5266_v1 }
  0xe2   :  { %4093 = vmatmul.mubr.msk.bf16.gmra.mrb[44].mxu0 %vm178_vm0, %v5659_v33 }
  0xe3   :  { %648 = vmatprep.mubr.bf16.mxu0 %v5266_v1 }
  0xea   :  { %4094 = vmatmul.mubr.msk.bf16.gmra.mrb[48].mxu0 %vm178_vm0, %v5665_v34 }
  0xeb   :  { %658 = vmatprep.mubr.bf16.mxu0 %v5266_v1 }
  0xf2   :  { %4095 = vmatmul.mubr.msk.bf16.gmra.mrb[52].mxu0 %vm178_vm0, %v5671_v35 }
  0xf3   :  { %778 = vmatprep.mubr.bf16.mxu0 %v5266_v1 }
  0xfa   :  { %4120 = vmatmul.mubr.msk.bf16.vlgmr.msra.gmra.mrb[0].mxu0 %vm178_vm0, %v5351_v11  ;;  %v5075_v11 = vld [vmem:[%s6723_s1 + $0x154] ss:$8 sps:$4 sm:$0xff]  }
  0xfb   :  { %1053 = vmatpush1.bf16.msra.mxu0 %v5064_v38  ;;  %788 = vmatprep.mubr.bf16.mxu0 %v5266_v1 }
  0xfc   :  { %1054 = vmatprep.subr.bf16.mxu0 %v5069_v39 }
  0xff   :  { %1055 = vmatpush1.bf16.msra.mxu0 %v5067_v40 }
 0x100   :  { %1056 = vmatprep.subr.bf16.mxu0 %v5072_v41 }
 0x102   :  { %4121 = vmatmul.mubr.msk.bf16.gmra.mrb[4].mxu0 %vm178_vm0, %v5376_v19 }
 0x103   :  { %798 = vmatprep.mubr.bf16.mxu0 %v5266_v1  ;;  %1057 = vmatpush1.bf16.msra.mxu0 %v5070_v42 }
 0x104   :  { %1058 = vmatprep.subr.bf16.mxu0 %v5075_v11 }
 0x107   :  { %1059 = vmatpush1.bf16.msra.mxu0 %v5073_v44 }
 0x108   :  { %1060 = vmatprep.subr.bf16.mxu0 %v5078_v46 }
 0x10a   :  { %4122 = vmatmul.mubr.msk.bf16.gmra.mrb[8].mxu0 %vm178_vm0, %v5399_v27 }
 0x10b   :  { %808 = vmatprep.mubr.bf16.mxu0 %v5266_v1  ;;  %1061 = vmatpush1.bf16.msra.mxu0 %v5076_v47 }
 0x10c   :  { %1062 = vmatprep.subr.bf16.mxu0 %v5081_v50 }
 0x10f   :  { %1063 = vmatpush1.bf16.msra.mxu0 %v5079_v51 }
 0x110   :  { %1358 = vmatprep.subr.bf16.mxu0 %v5084_v54 }
 0x112   :  { %4123 = vmatmul.mubr.msk.bf16.gmra.mrb[12].mxu0 %vm178_vm0, %v5427_v36 }
 0x113   :  { %818 = vmatprep.mubr.bf16.mxu0 %v5266_v1 }
 0x11a   :  { %4124 = vmatmul.mubr.msk.bf16.gmra.mrb[16].mxu0 %vm178_vm0, %v5449_v43 }
 0x11b   :  { %828 = vmatprep.mubr.bf16.mxu0 %v5266_v1 }
 0x122   :  { %4125 = vmatmul.mubr.msk.bf16.gmra.mrb[20].mxu0 %vm178_vm0, %v5465_v48 }
 0x123   :  { %838 = vmatprep.mubr.bf16.mxu0 %v5266_v1 }
 0x12a   :  { %4126 = vmatmul.mubr.msk.bf16.gmra.mrb[24].mxu0 %vm178_vm0, %v5478_v52 }
 0x12b   :  { %848 = vmatprep.mubr.bf16.mxu0 %v5266_v1 }
 0x132   :  { %4127 = vmatmul.mubr.msk.bf16.gmra.mrb[28].mxu0 %vm178_vm0, %v5491_v56 }
 0x133   :  { %858 = vmatprep.mubr.bf16.mxu0 %v5266_v1 }
 0x13a   :  { %4128 = vmatmul.mubr.msk.bf16.gmra.mrb[32].mxu0 %vm178_vm0, %v5504_v60 }
 0x13b   :  { %868 = vmatprep.mubr.bf16.mxu0 %v5266_v1 }
 0x142   :  { %4129 = vmatmul.mubr.msk.bf16.gmra.mrb[36].mxu0 %vm178_vm0, %v5517_v0 }
 0x143   :  { %878 = vmatprep.mubr.bf16.mxu0 %v5266_v1 }
 0x14a   :  { %4130 = vmatmul.mubr.msk.bf16.gmra.mrb[40].mxu0 %vm178_vm0, %v5659_v33 }
 0x14b   :  { %888 = vmatprep.mubr.bf16.mxu0 %v5266_v1 }
 0x152   :  { %4131 = vmatmul.mubr.msk.bf16.gmra.mrb[44].mxu0 %vm178_vm0, %v5665_v34 }
 0x153   :  { %898 = vmatprep.mubr.bf16.mxu0 %v5266_v1 }
 0x15a   :  { %4132 = vmatmul.mubr.msk.bf16.gmra.mrb[48].mxu0 %vm178_vm0, %v5671_v35 }
 0x15b   :  { %908 = vmatprep.mubr.bf16.mxu0 %v5266_v1 }
 0x162   :  { %4133 = vmatmul.mubr.msk.bf16.gmra.mrb[52].mxu0 %vm178_vm0, %v5758_v58 }
 0x163   :  { %1084 = vmatprep.mubr.bf16.mxu0 %v5266_v1 }
 0x16a   :  { %4158 = vmatmul.mubr.msk.bf16.vlgmr.msra.gmra.mrb[0].mxu0 %vm178_vm0, %v5407_v30  ;;  %v5093_v30 = vld [vmem:[%s6723_s1 + $0x1b4] ss:$8 sps:$4 sm:$0xff]  }
 0x16b   :  { %1359 = vmatpush1.bf16.msra.mxu0 %v5082_v59  ;;  %1094 = vmatprep.mubr.bf16.mxu0 %v5266_v1 }
 0x16c   :  { %1360 = vmatprep.subr.bf16.mxu0 %v5087_v62 }
 0x16f   :  { %1361 = vmatpush1.bf16.msra.mxu0 %v5085_v63 }
 0x170   :  { %1362 = vmatprep.subr.bf16.mxu0 %v5090_v4 }
 0x172   :  { %4159 = vmatmul.mubr.msk.bf16.gmra.mrb[4].mxu0 %vm178_vm0, %v5429_v37  ;;  %v5099_v37 = vld [vmem:[%s6723_s1 + $0x1d4] ss:$8 sps:$4 sm:$0xff]  }
 0x173   :  { %1104 = vmatprep.mubr.bf16.mxu0 %v5266_v1  ;;  %1363 = vmatpush1.bf16.msra.mxu0 %v5088_v6 }
 0x174   :  { %1364 = vmatprep.subr.bf16.mxu0 %v5093_v30 }
 0x177   :  { %1365 = vmatpush1.bf16.msra.mxu0 %v5091_v7  ;;  %v5111_v7 = vld [vmem:[%s6725_s2 + $0x54] sm:$0xff]  }
 0x178   :  { %1366 = vmatprep.subr.bf16.mxu0 %v5096_v9 }
 0x17a   :  { %4160 = vmatmul.mubr.msk.bf16.gmra.mrb[8].mxu0 %vm178_vm0, %v5454_v45  ;;  %v5100_v45 = vld [vmem:[%s6725_s2] sm:$0xff]  }
 0x17b   :  { %1114 = vmatprep.mubr.bf16.mxu0 %v5266_v1  ;;  %1367 = vmatpush1.bf16.msra.mxu0 %v5094_v10 }
 0x17c   :  { %1368 = vmatprep.subr.bf16.mxu0 %v5099_v37  ;;  %1864 = vmatpush1.bf16.msra.mxu1 %v5100_v45 }
 0x17d   :  { %1865 = vmatprep.subr.bf16.mxu1 %v5266_v1 }
 0x17f   :  { %1369 = vmatpush1.bf16.msra.mxu0 %v5097_v13 }
 0x182   :  { %4161 = vmatmul.mubr.msk.bf16.gmra.mrb[12].mxu0 %vm178_vm0, %v5467_v49  ;;  %v5101_v49 = vld [vmem:[%s6725_s2 + $0x8] sm:$0xff]  }
 0x183   :  { %1124 = vmatprep.mubr.bf16.mxu0 %v5266_v1  ;;  %1866 = vmatpush1.bf16.msra.mxu1 %v5101_v49 }
 0x184   :  { %1867 = vmatprep.subr.bf16.mxu1 %v5266_v1 }
 0x18a   :  { %4162 = vmatmul.mubr.msk.bf16.gmra.mrb[16].mxu0 %vm178_vm0, %v5480_v53  ;;  %v5102_v53 = vld [vmem:[%s6725_s2 + $0x10] sm:$0xff]  }
 0x18b   :  { %1134 = vmatprep.mubr.bf16.mxu0 %v5266_v1  ;;  %1868 = vmatpush1.bf16.msra.mxu1 %v5102_v53 }
 0x18c   :  { %1869 = vmatprep.subr.bf16.mxu1 %v5266_v1 }
 0x192   :  { %4163 = vmatmul.mubr.msk.bf16.gmra.mrb[20].mxu0 %vm178_vm0, %v5493_v57  ;;  %v5845_v57 = vld [vmem:[%s6724_s0 + $0xf0] sm:$0xff] }
 0x193   :  { %1144 = vmatprep.mubr.bf16.mxu0 %v5266_v1 }
 0x19a   :  { %4164 = vmatmul.mubr.msk.bf16.gmra.mrb[24].mxu0 %vm178_vm0, %v5506_v61  ;;  %v5103_v61 = vld [vmem:[%s6725_s2 + $0x18] sm:$0xff]  }
 0x19b   :  { %1154 = vmatprep.mubr.bf16.mxu0 %v5266_v1  ;;  %1870 = vmatpush1.bf16.msra.mxu1 %v5103_v61 }
 0x19c   :  { %1871 = vmatprep.subr.bf16.mxu1 %v5266_v1 }
 0x1a2   :  { %4165 = vmatmul.mubr.msk.bf16.gmra.mrb[28].mxu0 %vm178_vm0, %v5519_v2  ;;  %v988_v2 = vpack.c.bf16 %v5845_v57, %v5754_v55 }
 0x1a3   :  { %1164 = vmatprep.mubr.bf16.mxu0 %v5266_v1 }
 0x1aa   :  { %4166 = vmatmul.mubr.msk.bf16.gmra.mrb[32].mxu0 %vm178_vm0, %v5524_v3  ;;  %v5104_v3 = vld [vmem:[%s6725_s2 + $0x20] sm:$0xff]  }
 0x1ab   :  { %1174 = vmatprep.mubr.bf16.mxu0 %v5266_v1  ;;  %1872 = vmatpush1.bf16.msra.mxu1 %v5104_v3 }
 0x1ac   :  { %1873 = vmatprep.subr.bf16.mxu1 %v5266_v1 }
 0x1b2   :  { %4167 = vmatmul.mubr.msk.bf16.gmra.mrb[36].mxu0 %vm178_vm0, %v5535_v5  ;;  %v5105_v5 = vld [vmem:[%s6725_s2 + $0x28] sm:$0xff]  }
 0x1b3   :  { %1184 = vmatprep.mubr.bf16.mxu0 %v5266_v1  ;;  %1874 = vmatpush1.bf16.msra.mxu1 %v5105_v5 }
 0x1b4   :  { %1875 = vmatprep.subr.bf16.mxu1 %v5266_v1 }
 0x1ba   :  { %4168 = vmatmul.mubr.msk.bf16.gmra.mrb[40].mxu0 %vm178_vm0, %v5552_v8 }
 0x1bb   :  { %1194 = vmatprep.mubr.bf16.mxu0 %v5266_v1 }
 0x1c2   :  { %4169 = vmatmul.mubr.msk.bf16.gmra.mrb[44].mxu0 %vm178_vm0, %v5566_v12 }
 0x1c3   :  { %1204 = vmatprep.mubr.bf16.mxu0 %v5266_v1 }
 0x1ca   :  { %4170 = vmatmul.mubr.msk.bf16.gmra.mrb[48].mxu0 %vm178_vm0, %v5580_v15 }
 0x1cb   :  { %1214 = vmatprep.mubr.bf16.mxu0 %v5266_v1 }
 0x1d2   :  { %4171 = vmatmul.mubr.msk.bf16.gmra.mrb[52].mxu0 %vm178_vm0, %v988_v2 }
 0x1d3   :  { %1390 = vmatprep.mubr.bf16.mxu0 %v5266_v1 }
 0x1da   :  { %4196 = vmatmul.mubr.msk.bf16.vlgmr.msra.gmra.mrb[0].mxu0 %vm178_vm0, %v5376_v19  ;;  %v5106_v19 = vld [vmem:[%s6725_s2 + $0x30] sm:$0xff]  }
 0x1db   :  { %1400 = vmatprep.mubr.bf16.mxu0 %v5266_v1  ;;  %1876 = vmatpush1.bf16.msra.mxu1 %v5106_v19 }
 0x1dc   :  { %1877 = vmatprep.subr.bf16.mxu1 %v5266_v1 }
 0x1e2   :  { %4197 = vmatmul.mubr.msk.bf16.gmra.mrb[4].mxu0 %vm178_vm0, %v5399_v27  ;;  %v5107_v27 = vld [vmem:[%s6725_s2 + $0x38] sm:$0xff]  }
 0x1e3   :  { %1410 = vmatprep.mubr.bf16.mxu0 %v5266_v1  ;;  %1878 = vmatpush1.bf16.msra.mxu1 %v5107_v27 }
 0x1e4   :  { %1879 = vmatprep.subr.bf16.mxu1 %v5266_v1 }
 0x1ea   :  { %4198 = vmatmul.mubr.msk.bf16.gmra.mrb[8].mxu0 %vm178_vm0, %v5427_v36  ;;  %v5108_v36 = vld [vmem:[%s6725_s2 + $0x40] sm:$0xff]  }
 0x1eb   :  { %1420 = vmatprep.mubr.bf16.mxu0 %v5266_v1  ;;  %1880 = vmatpush1.bf16.msra.mxu1 %v5108_v36 }
 0x1ec   :  { %1881 = vmatprep.subr.bf16.mxu1 %v5266_v1 }
 0x1f2   :  { %4199 = vmatmul.mubr.msk.bf16.gmra.mrb[12].mxu0 %vm178_vm0, %v5449_v43  ;;  %v5109_v43 = vld [vmem:[%s6725_s2 + $0x48] sm:$0xff]  }
 0x1f3   :  { %1430 = vmatprep.mubr.bf16.mxu0 %v5266_v1  ;;  %1882 = vmatpush1.bf16.msra.mxu1 %v5109_v43  ;;  %v5113_v43 = vld [vmem:[%s6725_s2 + $0x64] sm:$0xff]  }
 0x1f4   :  { %1883 = vmatprep.subr.bf16.mxu1 %v5266_v1 }
 0x1fa   :  { %4200 = vmatmul.mubr.msk.bf16.gmra.mrb[16].mxu0 %vm178_vm0, %v5465_v48  ;;  %v64_v48 = vld [vmem:[%s6724_s0 + $0xf8] sm:$0xff] }
 0x1fb   :  { %1440 = vmatprep.mubr.bf16.mxu0 %v5266_v1 }
 0x202   :  { %4201 = vmatmul.mubr.msk.bf16.gmra.mrb[20].mxu0 %vm178_vm0, %v5478_v52  ;;  %v5110_v52 = vld [vmem:[%s6725_s2 + $0x50] ss:$0 sps:$4 sm:$0xff]  }
 0x203   :  { %1450 = vmatprep.mubr.bf16.mxu0 %v5266_v1 }
 0x20a   :  { %4202 = vmatmul.mubr.msk.bf16.gmra.mrb[24].mxu0 %vm178_vm0, %v5491_v56  ;;  %v1294_v56 = vpack.c.bf16 %v64_v48, %v5845_v57  ;;  %v5112_v57 = vld [vmem:[%s6725_s2 + $0x5c] sm:$0xff]  }
 0x20b   :  { %1460 = vmatprep.mubr.bf16.mxu0 %v5266_v1 }
 0x212   :  { %4203 = vmatmul.mubr.msk.bf16.gmra.mrb[28].mxu0 %vm178_vm0, %v5504_v60  ;;  %v1861_v60 = vsel %vm1859_vm1, %v5110_v52, 0 }
 0x213   :  { %1470 = vmatprep.mubr.bf16.mxu0 %v5266_v1  ;;  %1884 = vmatpush1.bf16.msra.mxu1 %v1861_v60 }
 0x214   :  { %2040 = vmatprep.subr.bf16.mxu1 %v5266_v1 }
 0x21a   :  { %4204 = vmatmul.mubr.msk.bf16.gmra.mrb[32].mxu0 %vm178_vm0, %v5517_v0  ;;  %v1589_v0 = vlaneseq }
 0x21b   :  { %1480 = vmatprep.mubr.bf16.mxu0 %v5266_v1 }
 0x21c   :  { %v5933_v8 = vshrl.u32 %v1589_v0, 7 }
 0x21e   :  { %v1591_v12 = vsub.s32 0, %v5933_v8  ;;  %v1595_v15 = vsub.s32 1, %v5933_v8 }
 0x220   :  { %v5942_v16 = vrot.slane %v1587_v14, %v1591_v12  ;;  %v5946_v17 = vrot.slane %v1587_v14, %v1595_v15 }
 0x222   :  { %4205 = vmatmul.mubr.msk.bf16.gmra.mrb[36].mxu0 %vm178_vm0, %v5659_v33 }
 0x223   :  { %1490 = vmatprep.mubr.bf16.mxu0 %v5266_v1 }
 0x22a   :  { %4206 = vmatmul.mubr.msk.bf16.gmra.mrb[40].mxu0 %vm178_vm0, %v5665_v34 }
 0x22b   :  { %1500 = vmatprep.mubr.bf16.mxu0 %v5266_v1 }
 0x232   :  { %4207 = vmatmul.mubr.msk.bf16.gmra.mrb[44].mxu0 %vm178_vm0, %v5671_v35 }
 0x233   :  { %1510 = vmatprep.mubr.bf16.mxu0 %v5266_v1 }
 0x23a   :  { %4208 = vmatmul.mubr.msk.bf16.gmra.mrb[48].mxu0 %vm178_vm0, %v5758_v58 }
 0x23b   :  { %1520 = vmatprep.mubr.bf16.mxu0 %v5266_v1 }
 0x242   :  { %4209 = vmatmul.mubr.msk.bf16.gmra.mrb[52].mxu0 %vm178_vm0, %v1294_v56 }
 0x2ad   :  { %v1392_v20 = vpop.f32.mrb[0].mxu0 }
 0x2ae   :  { %v1599_v21 = vadd.f32 %v5942_v16, %v1392_v20  ;;  %v1394_v22 = vpop.f32.mrb[1].mxu0 }
 0x2af   :  { %v1600_v18 = vadd.f32 %v5946_v17, %v1394_v22  ;;  %v1396_v23 = vpop.f32.mrb[2].mxu0 }
 0x2b0   :  { %v1601_v24 = vadd.f32 %v5942_v16, %v1396_v23  ;;  %v1398_v25 = vpop.f32.mrb[3].mxu0  ;;  %v1655_v28 = vmax.f32 %v1599_v21, 0.0  ;;  %v5114_v21 = vld [vmem:[%s6725_s2 + $0x6c] sm:$0xff]  }
 0x2b1   :  { %v1602_v26 = vadd.f32 %v5946_v17, %v1398_v25  ;;  %v1656_v31 = vmax.f32 %v1600_v18, 0.0 }
 0x2b2   :  { %v1657_v29 = vmax.f32 %v1601_v24, 0.0 }
 0x2b3   :  { %v1658_v32 = vmax.f32 %v1602_v26, 0.0 }
 0x2b4   :  { %v1711_v33 = vmax.f32 %v1655_v28, %v1657_v29 }
 0x2b5   :  { %v1712_v34 = vmax.f32 %v1656_v31, %v1658_v32  ;;  %v1402_v35 = vpop.f32.mrb[4].mxu0  ;;  %v5115_v32 = vld [vmem:[%s6725_s2 + $0x74] sm:$0xff]  }
 0x2b6   :  { %v1603_v38 = vadd.f32 %v5942_v16, %v1402_v35  ;;  %v1404_v39 = vpop.f32.mrb[5].mxu0 }
 0x2b7   :  { %v1604_v40 = vadd.f32 %v5946_v17, %v1404_v39  ;;  %v1406_v41 = vpop.f32.mrb[6].mxu0 }
 0x2b8   :  { %v1605_v42 = vadd.f32 %v5942_v16, %v1406_v41  ;;  %v1408_v11 = vpop.f32.mrb[7].mxu0  ;;  %v1659_v46 = vmax.f32 %v1603_v38, 0.0 }
 0x2b9   :  { %v1606_v44 = vadd.f32 %v5946_v17, %v1408_v11  ;;  %v1660_v50 = vmax.f32 %v1604_v40, 0.0 }
 0x2ba   :  { %v1661_v47 = vmax.f32 %v1605_v42, 0.0  ;;  %v5116_v42 = vld [vmem:[%s6725_s2 + $0x7c] sm:$0xff]  }
 0x2bb   :  { %v1662_v51 = vmax.f32 %v1606_v44, 0.0 }
 0x2bc   :  { %v1713_v54 = vmax.f32 %v1659_v46, %v1661_v47 }
 0x2bd   :  { %v1714_v55 = vmax.f32 %v1660_v50, %v1662_v51  ;;  %v1412_v58 = vpop.f32.mrb[8].mxu0 }
 0x2be   :  { %v1607_v59 = vadd.f32 %v5942_v16, %v1412_v58  ;;  %v1414_v62 = vpop.f32.mrb[9].mxu0  ;;  %v5957_v63 = vpack.c.bf16 %v1713_v54, %v1711_v33 }
 0x2bf   :  { %v1608_v4 = vadd.f32 %v5946_v17, %v1414_v62  ;;  %v1416_v6 = vpop.f32.mrb[10].mxu0  ;;  %v5960_v30 = vpack.c.bf16 %v1714_v55, %v1712_v34  ;;  %v5117_v55 = vld [vmem:[%s6725_s2 + $0x84] sm:$0xff]  }
 0x2c0   :  { %v1609_v9 = vadd.f32 %v5942_v16, %v1416_v6  ;;  %v1418_v10 = vpop.f32.mrb[11].mxu0  ;;  %v1663_v13 = vmax.f32 %v1607_v59, 0.0 }
 0x2c1   :  { %v1610_v37 = vadd.f32 %v5946_v17, %v1418_v10  ;;  %4221 = vmatprep.mubr.msk.bf16.mxu1 %vm1837_vm2, %v5960_v30  ;;  %v1664_v49 = vmax.f32 %v1608_v4, 0.0  ;;  %v5118_v10 = vld [vmem:[%s6725_s2 + $0x8c] sm:$0xff]  }
 0x2c2   :  { %v1665_v45 = vmax.f32 %v1609_v9, 0.0  ;;  %1896 = vmatmul.mubr.bf16.vlgmr.msra.gmra.mrb[0].mxu1 %v5957_v63 }
 0x2c3   :  { %v1666_v53 = vmax.f32 %v1610_v37, 0.0  ;;  %2041 = vmatpush1.bf16.msra.mxu1 %v5111_v7 }
 0x2c4   :  { %v1715_v61 = vmax.f32 %v1663_v13, %v1665_v45  ;;  %2042 = vmatprep.subr.bf16.mxu1 %v5266_v1 }
 0x2c5   :  { %v1716_v2 = vmax.f32 %v1664_v49, %v1666_v53  ;;  %v1422_v3 = vpop.f32.mrb[12].mxu0 }
 0x2c6   :  { %v1611_v5 = vadd.f32 %v5942_v16, %v1422_v3  ;;  %v1424_v19 = vpop.f32.mrb[13].mxu0 }
 0x2c7   :  { %v1612_v27 = vadd.f32 %v5946_v17, %v1424_v19  ;;  %v1426_v36 = vpop.f32.mrb[14].mxu0  ;;  %2043 = vmatpush1.bf16.msra.mxu1 %v5112_v57 }
 0x2c8   :  { %v1613_v48 = vadd.f32 %v5942_v16, %v1426_v36  ;;  %v1428_v52 = vpop.f32.mrb[15].mxu0  ;;  %2044 = vmatprep.subr.bf16.mxu1 %v5266_v1  ;;  %v1667_v60 = vmax.f32 %v1611_v5, 0.0  ;;  %v5119_v5 = vld [vmem:[%s6725_s2 + $0x94] sm:$0xff]  }
 0x2c9   :  { %v1614_v56 = vadd.f32 %v5946_v17, %v1428_v52  ;;  %v1668_v14 = vmax.f32 %v1612_v27, 0.0 }
 0x2ca   :  { %v1669_v0 = vmax.f32 %v1613_v48, 0.0 }
 0x2cb   :  { %v1670_v20 = vmax.f32 %v1614_v56, 0.0  ;;  %2045 = vmatpush1.bf16.msra.mxu1 %v5113_v43 }
 0x2cc   :  { %v1717_v22 = vmax.f32 %v1667_v60, %v1669_v0  ;;  %2046 = vmatprep.subr.bf16.mxu1 %v5266_v1  ;;  %v5120_v60 = vld [vmem:[%s6725_s2 + $0x9c] sm:$0xff]  }
 0x2cd   :  { %v1718_v18 = vmax.f32 %v1668_v14, %v1670_v20  ;;  %v1432_v23 = vpop.f32.mrb[16].mxu0  ;;  %v5121_v14 = vld [vmem:[%s6725_s2 + $0xa4] ss:$0 sps:$4 sm:$0xff]  }
 0x2ce   :  { %v1615_v24 = vadd.f32 %v5942_v16, %v1432_v23  ;;  %v1434_v25 = vpop.f32.mrb[17].mxu0  ;;  %v5987_v26 = vpack.c.bf16 %v1717_v22, %v1715_v61 }
 0x2cf   :  { %v5989_v28 = vpack.c.bf16 %v1718_v18, %v1716_v2  ;;  %v1616_v29 = vadd.f32 %v5946_v17, %v1434_v25  ;;  %v1436_v31 = vpop.f32.mrb[18].mxu0  ;;  %2047 = vmatpush1.bf16.msra.mxu1 %v5114_v21 }
 0x2d0   :  { %v1617_v33 = vadd.f32 %v5942_v16, %v1436_v31  ;;  %v1438_v34 = vpop.f32.mrb[19].mxu0  ;;  %2048 = vmatprep.subr.bf16.mxu1 %v5266_v1  ;;  %v1671_v38 = vmax.f32 %v1615_v24, 0.0  ;;  %v2038_v31 = vsel %vm1859_vm1, %v5121_v14, 0 }
 0x2d1   :  { %v1618_v35 = vadd.f32 %v5946_v17, %v1438_v34  ;;  %4222 = vmatprep.mubr.msk.bf16.mxu1 %vm1837_vm2, %v5989_v28  ;;  %v1672_v40 = vmax.f32 %v1616_v29, 0.0 }
 0x2d2   :  { %v1673_v39 = vmax.f32 %v1617_v33, 0.0  ;;  %1904 = vmatmul.mubr.bf16.gmra.mrb[4].mxu1 %v5987_v26 }
 0x2d3   :  { %v1674_v41 = vmax.f32 %v1618_v35, 0.0  ;;  %2049 = vmatpush1.bf16.msra.mxu1 %v5115_v32 }
 0x2d4   :  { %v1719_v11 = vmax.f32 %v1671_v38, %v1673_v39  ;;  %2050 = vmatprep.subr.bf16.mxu1 %v5266_v1 }
 0x2d5   :  { %v1720_v44 = vmax.f32 %v1672_v40, %v1674_v41  ;;  %v1442_v46 = vpop.f32.mrb[20].mxu0 }
 0x2d6   :  { %v1619_v47 = vadd.f32 %v5942_v16, %v1442_v46  ;;  %v1444_v50 = vpop.f32.mrb[21].mxu0 }
 0x2d7   :  { %v1620_v51 = vadd.f32 %v5946_v17, %v1444_v50  ;;  %v1446_v54 = vpop.f32.mrb[22].mxu0  ;;  %2051 = vmatpush1.bf16.msra.mxu1 %v5116_v42 }
 0x2d8   :  { %v1621_v58 = vadd.f32 %v5942_v16, %v1446_v54  ;;  %v1448_v59 = vpop.f32.mrb[23].mxu0  ;;  %2052 = vmatprep.subr.bf16.mxu1 %v5266_v1  ;;  %v1675_v4 = vmax.f32 %v1619_v47, 0.0 }
 0x2d9   :  { %v1622_v62 = vadd.f32 %v5946_v17, %v1448_v59  ;;  %v1676_v7 = vmax.f32 %v1620_v51, 0.0 }
 0x2da   :  { %v1677_v6 = vmax.f32 %v1621_v58, 0.0 }
 0x2db   :  { %v1678_v9 = vmax.f32 %v1622_v62, 0.0  ;;  %2053 = vmatpush1.bf16.msra.mxu1 %v5117_v55 }
 0x2dc   :  { %v1721_v37 = vmax.f32 %v1675_v4, %v1677_v6  ;;  %2054 = vmatprep.subr.bf16.mxu1 %v5266_v1 }
 0x2dd   :  { %v1722_v13 = vmax.f32 %v1676_v7, %v1678_v9  ;;  %v1452_v45 = vpop.f32.mrb[24].mxu0 }
 0x2de   :  { %v1623_v49 = vadd.f32 %v5942_v16, %v1452_v45  ;;  %v1454_v53 = vpop.f32.mrb[25].mxu0  ;;  %v6018_v57 = vpack.c.bf16 %v1721_v37, %v1719_v11 }
 0x2df   :  { %v6020_v61 = vpack.c.bf16 %v1722_v13, %v1720_v44  ;;  %v1624_v2 = vadd.f32 %v5946_v17, %v1454_v53  ;;  %v1456_v3 = vpop.f32.mrb[26].mxu0  ;;  %2055 = vmatpush1.bf16.msra.mxu1 %v5118_v10 }
 0x2e0   :  { %v1625_v19 = vadd.f32 %v5942_v16, %v1456_v3  ;;  %v1458_v27 = vpop.f32.mrb[27].mxu0  ;;  %2056 = vmatprep.subr.bf16.mxu1 %v5266_v1  ;;  %v1679_v43 = vmax.f32 %v1623_v49, 0.0 }
 0x2e1   :  { %v1626_v36 = vadd.f32 %v5946_v17, %v1458_v27  ;;  %4223 = vmatprep.mubr.msk.bf16.mxu1 %vm1837_vm2, %v6020_v61  ;;  %v1680_v52 = vmax.f32 %v1624_v2, 0.0 }
 0x2e2   :  { %v1681_v48 = vmax.f32 %v1625_v19, 0.0  ;;  %1912 = vmatmul.mubr.bf16.gmra.mrb[8].mxu1 %v6018_v57 }
 0x2e3   :  { %v1682_v56 = vmax.f32 %v1626_v36, 0.0  ;;  %2057 = vmatpush1.bf16.msra.mxu1 %v5119_v5 }
 0x2e4   :  { %v1723_v0 = vmax.f32 %v1679_v43, %v1681_v48  ;;  %2058 = vmatprep.subr.bf16.mxu1 %v5266_v1 }
 0x2e5   :  { %v1724_v20 = vmax.f32 %v1680_v52, %v1682_v56  ;;  %v1462_v21 = vpop.f32.mrb[28].mxu0 }
 0x2e6   :  { %v1627_v22 = vadd.f32 %v5942_v16, %v1462_v21  ;;  %v1464_v18 = vpop.f32.mrb[29].mxu0 }
 0x2e7   :  { %v1628_v23 = vadd.f32 %v5946_v17, %v1464_v18  ;;  %v1466_v24 = vpop.f32.mrb[30].mxu0  ;;  %2059 = vmatpush1.bf16.msra.mxu1 %v5120_v60 }
 0x2e8   :  { %v1629_v25 = vadd.f32 %v5942_v16, %v1466_v24  ;;  %v1468_v29 = vpop.f32.mrb[31].mxu0  ;;  %2060 = vmatprep.subr.bf16.mxu1 %v5266_v1  ;;  %v1683_v33 = vmax.f32 %v1627_v22, 0.0 }
 0x2e9   :  { %v1630_v32 = vadd.f32 %v5946_v17, %v1468_v29  ;;  %v1684_v35 = vmax.f32 %v1628_v23, 0.0 }
 0x2ea   :  { %v1685_v34 = vmax.f32 %v1629_v25, 0.0 }
 0x2eb   :  { %v1686_v38 = vmax.f32 %v1630_v32, 0.0  ;;  %2061 = vmatpush1.bf16.msra.mxu1 %v2038_v31 }
 0x2ec   :  { %v1725_v39 = vmax.f32 %v1683_v33, %v1685_v34 }
 0x2ed   :  { %v1726_v40 = vmax.f32 %v1684_v35, %v1686_v38  ;;  %v1472_v41 = vpop.f32.mrb[32].mxu0 }
 0x2ee   :  { %v1631_v42 = vadd.f32 %v5942_v16, %v1472_v41  ;;  %v1474_v11 = vpop.f32.mrb[33].mxu0  ;;  %v6046_v44 = vpack.c.bf16 %v1725_v39, %v1723_v0 }
 0x2ef   :  { %v6048_v46 = vpack.c.bf16 %v1726_v40, %v1724_v20  ;;  %v1632_v47 = vadd.f32 %v5946_v17, %v1474_v11  ;;  %v1476_v50 = vpop.f32.mrb[34].mxu0 }
 0x2f0   :  { %v1633_v51 = vadd.f32 %v5942_v16, %v1476_v50  ;;  %v1478_v54 = vpop.f32.mrb[35].mxu0  ;;  %v1687_v58 = vmax.f32 %v1631_v42, 0.0 }
 0x2f1   :  { %v1634_v55 = vadd.f32 %v5946_v17, %v1478_v54  ;;  %4224 = vmatprep.mubr.msk.bf16.mxu1 %vm1837_vm2, %v6048_v46  ;;  %v1688_v62 = vmax.f32 %v1632_v47, 0.0 }
 0x2f2   :  { %v1689_v59 = vmax.f32 %v1633_v51, 0.0  ;;  %1920 = vmatmul.mubr.bf16.gmra.mrb[12].mxu1 %v6046_v44 }
 0x2f3   :  { %v1690_v4 = vmax.f32 %v1634_v55, 0.0 }
 0x2f4   :  { %v1727_v6 = vmax.f32 %v1687_v58, %v1689_v59 }
 0x2f5   :  { %v1728_v7 = vmax.f32 %v1688_v62, %v1690_v4  ;;  %v1482_v9 = vpop.f32.mrb[36].mxu0 }
 0x2f6   :  { %v1635_v10 = vadd.f32 %v5942_v16, %v1482_v9  ;;  %v1484_v37 = vpop.f32.mrb[37].mxu0 }
 0x2f7   :  { %v1636_v13 = vadd.f32 %v5946_v17, %v1484_v37  ;;  %v1486_v45 = vpop.f32.mrb[38].mxu0 }
 0x2f8   :  { %v1637_v49 = vadd.f32 %v5942_v16, %v1486_v45  ;;  %v1488_v53 = vpop.f32.mrb[39].mxu0  ;;  %v1691_v3 = vmax.f32 %v1635_v10, 0.0 }
 0x2f9   :  { %v1638_v2 = vadd.f32 %v5946_v17, %v1488_v53  ;;  %v1692_v19 = vmax.f32 %v1636_v13, 0.0 }
 0x2fa   :  { %v1693_v5 = vmax.f32 %v1637_v49, 0.0 }
 0x2fb   :  { %v1694_v27 = vmax.f32 %v1638_v2, 0.0 }
 0x2fc   :  { %v1729_v36 = vmax.f32 %v1691_v3, %v1693_v5 }
 0x2fd   :  { %v1730_v43 = vmax.f32 %v1692_v19, %v1694_v27  ;;  %v1492_v48 = vpop.f32.mrb[40].mxu0 }
 0x2fe   :  { %v1639_v52 = vadd.f32 %v5942_v16, %v1492_v48  ;;  %v1494_v56 = vpop.f32.mrb[41].mxu0  ;;  %v6061_v60 = vpack.c.bf16 %v1729_v36, %v1727_v6 }
 0x2ff   :  { %v6063_v0 = vpack.c.bf16 %v1730_v43, %v1728_v7  ;;  %v1640_v14 = vadd.f32 %v5946_v17, %v1494_v56  ;;  %v1496_v20 = vpop.f32.mrb[42].mxu0 }
 0x300   :  { %v1641_v21 = vadd.f32 %v5942_v16, %v1496_v20  ;;  %v1498_v22 = vpop.f32.mrb[43].mxu0  ;;  %v1695_v23 = vmax.f32 %v1639_v52, 0.0 }
 0x301   :  { %v1642_v18 = vadd.f32 %v5946_v17, %v1498_v22  ;;  %4225 = vmatprep.mubr.msk.bf16.mxu1 %vm1837_vm2, %v6063_v0  ;;  %v1696_v25 = vmax.f32 %v1640_v14, 0.0 }
 0x302   :  { %v1697_v24 = vmax.f32 %v1641_v21, 0.0  ;;  %1928 = vmatmul.mubr.bf16.gmra.mrb[16].mxu1 %v6061_v60 }
 0x303   :  { %v1698_v29 = vmax.f32 %v1642_v18, 0.0 }
 0x304   :  { %v1731_v31 = vmax.f32 %v1695_v23, %v1697_v24 }
 0x305   :  { %v1732_v32 = vmax.f32 %v1696_v25, %v1698_v29  ;;  %v1502_v33 = vpop.f32.mrb[44].mxu0 }
 0x306   :  { %v1643_v34 = vadd.f32 %v5942_v16, %v1502_v33  ;;  %v1504_v35 = vpop.f32.mrb[45].mxu0  ;;  %v5141_v33 = vld [vmem:[%s6727_s3 + $0x4] ss:$8 sps:$4 sm:$0xff]  }
 0x307   :  { %v1644_v38 = vadd.f32 %v5946_v17, %v1504_v35  ;;  %v1506_v39 = vpop.f32.mrb[46].mxu0 }
 0x308   :  { %v1645_v40 = vadd.f32 %v5942_v16, %v1506_v39  ;;  %v1508_v41 = vpop.f32.mrb[47].mxu0  ;;  %v1699_v11 = vmax.f32 %v1643_v34, 0.0 }
 0x309   :  { %v1646_v42 = vadd.f32 %v5946_v17, %v1508_v41  ;;  %v1700_v50 = vmax.f32 %v1644_v38, 0.0 }
 0x30a   :  { %v1701_v47 = vmax.f32 %v1645_v40, 0.0 }
 0x30b   :  { %v1702_v51 = vmax.f32 %v1646_v42, 0.0 }
 0x30c   :  { %v1733_v54 = vmax.f32 %v1699_v11, %v1701_v47 }
 0x30d   :  { %v1734_v55 = vmax.f32 %v1700_v50, %v1702_v51  ;;  %v1512_v58 = vpop.f32.mrb[48].mxu0 }
 0x30e   :  { %v1647_v59 = vadd.f32 %v5942_v16, %v1512_v58  ;;  %v1514_v62 = vpop.f32.mrb[49].mxu0  ;;  %v1770_v4 = vpack.c.bf16 %v1733_v54, %v1731_v31 }
 0x30f   :  { %v1771_v6 = vpack.c.bf16 %v1734_v55, %v1732_v32  ;;  %v1648_v7 = vadd.f32 %v5946_v17, %v1514_v62  ;;  %v1516_v9 = vpop.f32.mrb[50].mxu0 }
 0x310   :  { %v1649_v10 = vadd.f32 %v5942_v16, %v1516_v9  ;;  %v1518_v37 = vpop.f32.mrb[51].mxu0  ;;  %v1703_v45 = vmax.f32 %v1647_v59, 0.0 }
 0x311   :  { %v1650_v13 = vadd.f32 %v5946_v17, %v1518_v37  ;;  %4226 = vmatprep.mubr.msk.bf16.mxu1 %vm1837_vm2, %v1771_v6  ;;  %v1704_v53 = vmax.f32 %v1648_v7, 0.0 }
 0x312   :  { %v1705_v49 = vmax.f32 %v1649_v10, 0.0  ;;  %1936 = vmatmul.mubr.bf16.gmra.mrb[20].mxu1 %v1770_v4 }
 0x313   :  { %v1706_v2 = vmax.f32 %v1650_v13, 0.0 }
 0x314   :  { %v1735_v3 = vmax.f32 %v1703_v45, %v1705_v49 }
 0x315   :  { %v1736_v5 = vmax.f32 %v1704_v53, %v1706_v2  ;;  %v1522_v19 = vpop.f32.mrb[52].mxu0 }
 0x316   :  { %v1651_v27 = vadd.f32 %v5942_v16, %v1522_v19  ;;  %v1524_v36 = vpop.f32.mrb[53].mxu0 }
 0x317   :  { %v1652_v43 = vadd.f32 %v5946_v17, %v1524_v36  ;;  %v1526_v48 = vpop.f32.mrb[54].mxu0 }
 0x318   :  { %v1653_v52 = vadd.f32 %v5942_v16, %v1526_v48  ;;  %v1528_v56 = vpop.f32.mrb[55].mxu0  ;;  %v1707_v20 = vmax.f32 %v1651_v27, 0.0  ;;  %v5122_v16 = vld [vmem:[%s6727_s3 + $0x58] ss:$8 sps:$4 sm:$0xff]  }
 0x319   :  { %v1654_v14 = vadd.f32 %v5946_v17, %v1528_v56  ;;  %v1708_v22 = vmax.f32 %v1652_v43, 0.0  ;;  %v5124_v17 = vld [vmem:[%s6727_s3 + $0x5c] ss:$8 sps:$4 sm:$0xff]  }
 0x31a   :  { %v1709_v21 = vmax.f32 %v1653_v52, 0.0  ;;  %2254 = vmatprep.subr.bf16.mxu1 %v5124_v17  ;;  %v5147_v17 = vld [vmem:[%s6727_s3 + $0x24] ss:$8 sps:$4 sm:$0xff]  }
 0x31b   :  { %v1710_v18 = vmax.f32 %v1654_v14, 0.0 }
 0x31c   :  { %v1737_v23 = vmax.f32 %v1707_v20, %v1709_v21 }
 0x31d   :  { %v1738_v24 = vmax.f32 %v1708_v22, %v1710_v18  ;;  %v5139_v22 = vld [vmem:[%s6727_s3] ss:$8 sps:$4 sm:$0xff]  }
 0x31e   :  { %v1772_v25 = vpack.c.bf16 %v1737_v23, %v1735_v3 }
 0x31f   :  { %v1773_v29 = vpack.c.bf16 %v1738_v24, %v1736_v5 }
 0x321   :  { %4227 = vmatprep.mubr.msk.bf16.mxu1 %vm1837_vm2, %v1773_v29 }
 0x322   :  { %1944 = vmatmul.mubr.bf16.gmra.mrb[24].mxu1 %v1772_v25 }
 0x323   :  { %4260 = vmatprep.mubr.msk.bf16.mxu1 %vm1837_vm2, %v5960_v30  ;;  %v5127_v30 = vld [vmem:[%s6727_s3 + $0x6c] ss:$8 sps:$4 sm:$0xff]  }
 0x32a   :  { %2073 = vmatmul.mubr.bf16.vlgmr.msra.gmra.mrb[28].mxu1 %v5957_v63  ;;  %v5125_v63 = vld [vmem:[%s6727_s3 + $0x68] ss:$8 sps:$4 sm:$0xff]  }
 0x32b   :  { %4261 = vmatprep.mubr.msk.bf16.mxu1 %vm1837_vm2, %v5989_v28  ;;  %2255 = vmatpush1.bf16.msra.mxu1 %v5122_v16  ;;  %v5130_v28 = vld [vmem:[%s6727_s3 + $0x7c] ss:$8 sps:$4 sm:$0xff]   ;;  %v5142_v16 = vld [vmem:[%s6727_s3 + $0x10] ss:$8 sps:$4 sm:$0xff]  }
 0x32c   :  { %2256 = vmatprep.subr.bf16.mxu1 %v5127_v30 }
 0x32f   :  { %2257 = vmatpush1.bf16.msra.mxu1 %v5125_v63 }
 0x330   :  { %2258 = vmatprep.subr.bf16.mxu1 %v5130_v28 }
 0x332   :  { %2081 = vmatmul.mubr.bf16.gmra.mrb[32].mxu1 %v5987_v26  ;;  %v5128_v26 = vld [vmem:[%s6727_s3 + $0x78] ss:$8 sps:$4 sm:$0xff]  }
 0x333   :  { %4262 = vmatprep.mubr.msk.bf16.mxu1 %vm1837_vm2, %v6020_v61  ;;  %2259 = vmatpush1.bf16.msra.mxu1 %v5128_v26  ;;  %v5133_v61 = vld [vmem:[%s6727_s3 + $0x8c] ss:$8 sps:$4 sm:$0xff]  }
 0x334   :  { %2260 = vmatprep.subr.bf16.mxu1 %v5133_v61 }
 0x33a   :  { %2089 = vmatmul.mubr.bf16.gmra.mrb[36].mxu1 %v6018_v57  ;;  %v5131_v57 = vld [vmem:[%s6727_s3 + $0x88] ss:$8 sps:$4 sm:$0xff]  }
 0x33b   :  { %4263 = vmatprep.mubr.msk.bf16.mxu1 %vm1837_vm2, %v6048_v46  ;;  %2261 = vmatpush1.bf16.msra.mxu1 %v5131_v57  ;;  %v5136_v46 = vld [vmem:[%s6727_s3 + $0x9c] ss:$8 sps:$4 sm:$0xff]   ;;  %v5145_v57 = vld [vmem:[%s6727_s3 + $0x20] ss:$8 sps:$4 sm:$0xff]  }
 0x33c   :  { %2262 = vmatprep.subr.bf16.mxu1 %v5136_v46 }
 0x342   :  { %2097 = vmatmul.mubr.bf16.gmra.mrb[40].mxu1 %v6046_v44  ;;  %v5134_v44 = vld [vmem:[%s6727_s3 + $0x98] ss:$8 sps:$4 sm:$0xff]  }
 0x343   :  { %4264 = vmatprep.mubr.msk.bf16.mxu1 %vm1837_vm2, %v6063_v0  ;;  %2263 = vmatpush1.bf16.msra.mxu1 %v5134_v44 }
 0x34a   :  { %2105 = vmatmul.mubr.bf16.gmra.mrb[44].mxu1 %v6061_v60  ;;  %v4277_v60 = vld [vmem:[%s6727_s3 + $0xa8] sm:$0x33] }
 0x34b   :  { %4265 = vmatprep.mubr.msk.bf16.mxu1 %vm1837_vm2, %v1771_v6  ;;  %v4289_v0 = vcombine.high %v4277_v60, %v4277_v60  ;;  %v4288_v31 = vcombine.low %v4277_v60, %v4277_v60  ;;  %v5150_v60 = vld [vmem:[%s6727_s3 + $0x34] ss:$8 sps:$4 sm:$0xff]  }
 0x34d   :  { %4290 = vmatprep.subr.msk.bf16.mxu1 %vm2247_vm3, %v4289_v0  ;;  %v2249_v32 = vsel %vm2247_vm3, %v4288_v31, 0  ;;  %v5148_v31 = vld [vmem:[%s6727_s3 + $0x30] ss:$8 sps:$4 sm:$0xff]  }
 0x34e   :  { %2265 = vmatpush1.bf16.msra.mxu1 %v2249_v32  ;;  %v5153_v32 = vld [vmem:[%s6727_s3 + $0x44] ss:$8 sps:$4 sm:$0xff]  }
 0x34f   :  { %2413 = vmatprep.subr.bf16.mxu1 %v5141_v33 }
 0x352   :  { %2113 = vmatmul.mubr.bf16.gmra.mrb[48].mxu1 %v1770_v4 }
 0x353   :  { %4266 = vmatprep.mubr.msk.bf16.mxu1 %vm1837_vm2, %v1773_v29 }
 0x35a   :  { %2121 = vmatmul.mubr.bf16.gmra.mrb[52].mxu1 %v1772_v25  ;;  %v5144_v25 = vld [vmem:[%s6727_s3 + $0x14] ss:$8 sps:$4 sm:$0xff]  }
 0x35b   :  { %2286 = vmatprep.mubr.bf16.mxu1 %v5266_v1 }
 0x395   :  { %v1897_v34 = vpop.f32.mrb[0].mxu1 }
 0x396   :  { %v1899_v35 = vpop.f32.mrb[1].mxu1 }
 0x397   :  { %v1900_v38 = vpop.f32.mrb[2].mxu1 }
 0x398   :  { %v1902_v39 = vpop.f32.mrb[3].mxu1 }
 0x3a5   :  { %v1905_v40 = vpop.f32.mrb[4].mxu1 }
 0x3a6   :  { %v1907_v41 = vpop.f32.mrb[5].mxu1 }
 0x3a7   :  { %v1908_v42 = vpop.f32.mrb[6].mxu1 }
 0x3a8   :  { %v1910_v11 = vpop.f32.mrb[7].mxu1 }
 0x3b5   :  { %v1913_v47 = vpop.f32.mrb[8].mxu1 }
 0x3b6   :  { %v1915_v50 = vpop.f32.mrb[9].mxu1 }
 0x3b7   :  { %v1916_v51 = vpop.f32.mrb[10].mxu1 }
 0x3b8   :  { %v1918_v54 = vpop.f32.mrb[11].mxu1 }
 0x3c5   :  { %v1921_v55 = vpop.f32.mrb[12].mxu1 }
 0x3c6   :  { %v1923_v58 = vpop.f32.mrb[13].mxu1 }
 0x3c7   :  { %v6141_v59 = vpop.f32.mrb[14].mxu1 }
 0x3c8   :  { %v1926_v62 = vpop.f32.mrb[15].mxu1 }
 0x3d5   :  { %v6143_v4 = vpop.f32.mrb[16].mxu1 }
 0x3d6   :  { %v1931_v6 = vpop.f32.mrb[17].mxu1 }
 0x3d7   :  { %v6145_v7 = vpop.f32.mrb[18].mxu1 }
 0x3d8   :  { %v1934_v9 = vpop.f32.mrb[19].mxu1 }
 0x3e5   :  { %v6147_v10 = vpop.f32.mrb[20].mxu1 }
 0x3e6   :  { %v1939_v37 = vpop.f32.mrb[21].mxu1 }
 0x3e7   :  { %v6149_v13 = vpop.f32.mrb[22].mxu1 }
 0x3e8   :  { %v1942_v45 = vpop.f32.mrb[23].mxu1 }
 0x3f5   :  { %v6151_v49 = vpop.f32.mrb[24].mxu1 }
 0x3f6   :  { %v1947_v53 = vpop.f32.mrb[25].mxu1 }
 0x3f7   :  { %v6153_v2 = vpop.f32.mrb[26].mxu1 }
 0x3f8   :  { %v1950_v3 = vpop.f32.mrb[27].mxu1 }
 0x3fd   :  { %v2074_v5 = vpop.f32.mrb[28].mxu1 }
 0x3fe   :  { %v2129_v19 = vmax.f32 %v1897_v34, %v2074_v5  ;;  %v2076_v27 = vpop.f32.mrb[29].mxu1  ;;  %v2153_v34 = vld [vmem:[%s6727_s3 + $0x50] sm:$0x33] }
 0x3ff   :  { %v2077_v36 = vpop.f32.mrb[30].mxu1  ;;  %v4306_v50 = vcombine.low %v2153_v34, %v2153_v34 }
 0x400   :  { %v2130_v43 = vmax.f32 %v1900_v38, %v2077_v36  ;;  %v2079_v48 = vpop.f32.mrb[31].mxu1 }
 0x401   :  { %v2408_v54 = vsel %vm2247_vm3, %v4306_v50, 0  ;;  %v5195_v50 = vld [vmem:[%s6727_s3 + $0x174] ss:$8 sps:$4 sm:$0xff]  }
 0x402   :  { %v6155_v52 = vpack.c.bf16 %v2130_v43, %v2129_v19 }
 0x405   :  { %v2082_v56 = vpop.f32.mrb[32].mxu1 }
 0x406   :  { %v2131_v14 = vmax.f32 %v1905_v40, %v2082_v56  ;;  %v2084_v20 = vpop.f32.mrb[33].mxu1  ;;  %v5151_v40 = vld [vmem:[%s6727_s3 + $0x40] ss:$8 sps:$4 sm:$0xff]  }
 0x407   :  { %v2085_v21 = vpop.f32.mrb[34].mxu1 }
 0x408   :  { %v2171_v18 = vpack.c.bf16 %v2131_v14, %v2130_v43  ;;  %v2132_v23 = vmax.f32 %v1908_v42, %v2085_v21  ;;  %v2087_v24 = vpop.f32.mrb[35].mxu1 }
 0x409   :  { %v5162_v24 = vld [vmem:[%s6727_s3 + $0xd0] ss:$8 sps:$4 sm:$0xff]  }
 0x40a   :  { %v6163_v29 = vpack.c.bf16 %v2132_v23, %v2131_v14  ;;  %4291 = vmatmul.mubr.msk.bf16.vlgmr.msra.gmra.mrb[56].mxu1 %vm2231_vm4, %v2171_v18  ;;  %v5161_v18 = vld [vmem:[%s6727_s3 + $0xc4] ss:$8 sps:$4 sm:$0xff]  }
 0x40b   :  { %2414 = vmatpush1.bf16.msra.mxu1 %v5139_v22  ;;  %2296 = vmatprep.mubr.bf16.mxu1 %v5266_v1 }
 0x40c   :  { %2415 = vmatprep.subr.bf16.mxu1 %v5144_v25  ;;  %v5165_v25 = vld [vmem:[%s6727_s3 + $0xe0] ss:$8 sps:$4 sm:$0xff]  }
 0x40d   :  { %v2090_v63 = vpop.f32.mrb[36].mxu1 }
 0x40e   :  { %v2133_v30 = vmax.f32 %v1913_v47, %v2090_v63  ;;  %v2092_v26 = vpop.f32.mrb[37].mxu1  ;;  %v4307_v47 = vcombine.high %v2153_v34, %v2153_v34  ;;  %v5168_v63 = vld [vmem:[%s6727_s3 + $0xf0] ss:$8 sps:$4 sm:$0xff]   ;;  %v5187_v34 = vld [vmem:[%s6727_s3 + $0x14c] ss:$8 sps:$4 sm:$0xff]  }
 0x40f   :  { %v2093_v28 = vpop.f32.mrb[38].mxu1  ;;  %2416 = vmatpush1.bf16.msra.mxu1 %v5142_v16  ;;  %v5170_v16 = vld [vmem:[%s6727_s3 + $0xf4] ss:$8 sps:$4 sm:$0xff]  }
 0x410   :  { %v6176_v61 = vpack.c.bf16 %v2133_v30, %v2132_v23  ;;  %v2134_v44 = vmax.f32 %v1916_v51, %v2093_v28  ;;  %v2095_v46 = vpop.f32.mrb[39].mxu1  ;;  %2417 = vmatprep.subr.bf16.mxu1 %v5147_v17  ;;  %v4324_v17 = vld [vmem:[%s6727_s3 + $0x100] sm:$0x33] }
 0x411   :  { %v4335_v26 = vcombine.low %v4324_v17, %v4324_v17  ;;  %v5178_v46 = vld [vmem:[%s6727_s3 + $0x11c] ss:$8 sps:$4 sm:$0xff]  }
 0x412   :  { %v6181_v0 = vpack.c.bf16 %v2134_v44, %v2133_v30  ;;  %4292 = vmatmul.mubr.msk.bf16.gmra.mrb[60].mxu1 %vm2231_vm4, %v6176_v61  ;;  %v4336_v30 = vcombine.high %v4324_v17, %v4324_v17 }
 0x413   :  { %2306 = vmatprep.mubr.bf16.mxu1 %v5266_v1  ;;  %2418 = vmatpush1.bf16.msra.mxu1 %v5145_v57  ;;  %v2568_v28 = vsel %vm2247_vm3, %v4335_v26, 0  ;;  %v5175_v57 = vld [vmem:[%s6727_s3 + $0x10c] ss:$8 sps:$4 sm:$0xff]  }
 0x414   :  { %2419 = vmatprep.subr.bf16.mxu1 %v5150_v60  ;;  %v5176_v60 = vld [vmem:[%s6727_s3 + $0x118] ss:$8 sps:$4 sm:$0xff]  }
 0x415   :  { %v2098_v33 = vpop.f32.mrb[40].mxu1 }
 0x416   :  { %v2135_v35 = vmax.f32 %v1921_v55, %v2098_v33  ;;  %v2100_v38 = vpop.f32.mrb[41].mxu1  ;;  %v5158_v55 = vld [vmem:[%s6727_s3 + $0xb4] ss:$8 sps:$4 sm:$0xff]   ;;  %v5182_v33 = vld [vmem:[%s6727_s3 + $0x138] ss:$8 sps:$4 sm:$0xff]  }
 0x417   :  { %v2101_v39 = vpop.f32.mrb[42].mxu1  ;;  %2420 = vmatpush1.bf16.msra.mxu1 %v5148_v31  ;;  %v5181_v31 = vld [vmem:[%s6727_s3 + $0x12c] ss:$8 sps:$4 sm:$0xff]   ;;  %v5185_v38 = vld [vmem:[%s6727_s3 + $0x148] ss:$8 sps:$4 sm:$0xff]  }
 0x418   :  { %v6198_v41 = vpack.c.bf16 %v2135_v35, %v2134_v44  ;;  %v2136_v42 = vmax.f32 %v6141_v59, %v2101_v39  ;;  %v2103_v11 = vpop.f32.mrb[43].mxu1  ;;  %2421 = vmatprep.subr.bf16.mxu1 %v5153_v32  ;;  %v5173_v44 = vld [vmem:[%s6727_s3 + $0x108] ss:$8 sps:$4 sm:$0xff]  }
 0x419   :  { %v5179_v32 = vld [vmem:[%s6727_s3 + $0x128] ss:$8 sps:$4 sm:$0xff]   ;;  %v5192_v11 = vld [vmem:[%s6727_s3 + $0x164] ss:$8 sps:$4 sm:$0xff]  }
 0x41a   :  { %v6201_v51 = vpack.c.bf16 %v2136_v42, %v2135_v35  ;;  %4293 = vmatmul.mubr.msk.bf16.gmra.mrb[64].mxu1 %vm2231_vm4, %v6198_v41  ;;  %v4353_v35 = vld [vmem:[%s6727_s3 + $0x158] sm:$0x33] }
 0x41b   :  { %2316 = vmatprep.mubr.bf16.mxu1 %v5266_v1  ;;  %2422 = vmatpush1.bf16.msra.mxu1 %v5151_v40  ;;  %v4365_v39 = vcombine.high %v4353_v35, %v4353_v35  ;;  %v4364_v40 = vcombine.low %v4353_v35, %v4353_v35 }
 0x41c   :  { %4308 = vmatprep.subr.msk.bf16.mxu1 %vm2247_vm3, %v4307_v47  ;;  %v5190_v47 = vld [vmem:[%s6727_s3 + $0x160] ss:$8 sps:$4 sm:$0xff]  }
 0x41d   :  { %v2106_v58 = vpop.f32.mrb[44].mxu1 }
 0x41e   :  { %v2137_v59 = vmax.f32 %v6143_v4, %v2106_v58  ;;  %v2108_v62 = vpop.f32.mrb[45].mxu1  ;;  %v5196_v58 = vld [vmem:[%s6727_s3 + $0x180] ss:$8 sps:$4 sm:$0xff]  }
 0x41f   :  { %v2109_v6 = vpop.f32.mrb[46].mxu1  ;;  %2424 = vmatpush1.bf16.msra.mxu1 %v2408_v54  ;;  %v5193_v54 = vld [vmem:[%s6727_s3 + $0x170] ss:$8 sps:$4 sm:$0xff]   ;;  %v5204_v62 = vld [vmem:[%s6727_s3 + $0x1a4] ss:$8 sps:$4 sm:$0xff]  }
 0x420   :  { %v6212_v9 = vpack.c.bf16 %v2137_v59, %v2136_v42  ;;  %v2138_v37 = vmax.f32 %v6145_v7, %v2109_v6  ;;  %v2111_v45 = vpop.f32.mrb[47].mxu1  ;;  %2573 = vmatprep.subr.bf16.mxu1 %v5158_v55  ;;  %v2748_v42 = vsel %vm2247_vm3, %v4364_v40, 0  ;;  %v5198_v55 = vld [vmem:[%s6727_s3 + $0x184] ss:$8 sps:$4 sm:$0xff]   ;;  %v4382_v6 = vld [vmem:[%s6727_s3 + $0x1b0] sm:$0x33] }
 0x421   :  { %v4393_v45 = vcombine.low %v4382_v6, %v4382_v6 }
 0x422   :  { %v6215_v53 = vpack.c.bf16 %v2138_v37, %v2137_v59  ;;  %4294 = vmatmul.mubr.msk.bf16.gmra.mrb[68].mxu1 %vm2231_vm4, %v6212_v9  ;;  %v5199_v59 = vld [vmem:[%s6727_s3 + $0x190] ss:$8 sps:$4 sm:$0xff]  }
 0x423   :  { %2326 = vmatprep.mubr.bf16.mxu1 %v5266_v1 }
 0x425   :  { %v2114_v3 = vpop.f32.mrb[48].mxu1 }
 0x426   :  { %v2139_v5 = vmax.f32 %v6147_v10, %v2114_v3  ;;  %v2116_v4 = vpop.f32.mrb[49].mxu1  ;;  %v2928_v3 = vsel %vm2247_vm3, %v4393_v45, 0 }
 0x427   :  { %v2117_v19 = vpop.f32.mrb[50].mxu1  ;;  %v5209_v4 = vld [vmem:[%s6728_s4 + $0x10] sm:$0xff]  }
 0x428   :  { %v6221_v27 = vpack.c.bf16 %v2139_v5, %v2138_v37  ;;  %v6224_v36 = vmax.f32 %v6149_v13, %v2117_v19  ;;  %v2119_v7 = vpop.f32.mrb[51].mxu1  ;;  %v5156_v13 = vld [vmem:[%s6727_s3 + $0xb0] ss:$8 sps:$4 sm:$0xff]   ;;  %v4394_v37 = vcombine.high %v4382_v6, %v4382_v6  ;;  %v5211_v19 = vld [vmem:[%s6728_s4 + $0x20] sm:$0xff]  }
 0x429   :  { %v5216_v7 = vld [vmem:[%s6728_s4 + $0x48] sm:$0xff]  }
 0x42a   :  { %v6227_v43 = vpack.c.bf16 %v6224_v36, %v2139_v5  ;;  %4295 = vmatmul.mubr.msk.bf16.gmra.mrb[72].mxu1 %vm2231_vm4, %v6221_v27  ;;  %v5208_v5 = vld [vmem:[%s6728_s4 + $0x8] sm:$0xff]  }
 0x42b   :  { %2445 = vmatprep.mubr.bf16.mxu1 %v5266_v1 }
 0x42d   :  { %v2122_v48 = vpop.f32.mrb[52].mxu1 }
 0x42e   :  { %v6233_v56 = vmax.f32 %v6151_v49, %v2122_v48  ;;  %v2124_v10 = vpop.f32.mrb[53].mxu1  ;;  %v5159_v49 = vld [vmem:[%s6727_s3 + $0xc0] ss:$8 sps:$4 sm:$0xff]  }
 0x42f   :  { %v2125_v14 = vpop.f32.mrb[54].mxu1 }
 0x430   :  { %v2688_v20 = vpack.c.bf16 %v6233_v56, %v6224_v36  ;;  %v2142_v21 = vmax.f32 %v6153_v2, %v2125_v14  ;;  %v2127_v22 = vpop.f32.mrb[55].mxu1  ;;  %v5164_v2 = vld [vmem:[%s6727_s3 + $0xd4] ss:$8 sps:$4 sm:$0xff]   ;;  %v5215_v36 = vld [vmem:[%s6728_s4 + $0x40] sm:$0xff]  }
 0x432   :  { %v6245_v23 = vpack.c.bf16 %v2142_v21, %v6233_v56  ;;  %4309 = vmatmul.mubr.msk.bf16.vlgmr.msra.gmra.mrb[56].mxu1 %vm2231_vm4, %v6155_v52  ;;  %v5167_v52 = vld [vmem:[%s6727_s3 + $0xe4] ss:$8 sps:$4 sm:$0xff]  }
 0x433   :  { %2574 = vmatpush1.bf16.msra.mxu1 %v5156_v13  ;;  %2455 = vmatprep.mubr.bf16.mxu1 %v5266_v1 }
 0x434   :  { %2575 = vmatprep.subr.bf16.mxu1 %v5161_v18 }
 0x437   :  { %2576 = vmatpush1.bf16.msra.mxu1 %v5159_v49 }
 0x438   :  { %2577 = vmatprep.subr.bf16.mxu1 %v5164_v2 }
 0x43a   :  { %4310 = vmatmul.mubr.msk.bf16.gmra.mrb[60].mxu1 %vm2231_vm4, %v6163_v29 }
 0x43b   :  { %2465 = vmatprep.mubr.bf16.mxu1 %v5266_v1  ;;  %2578 = vmatpush1.bf16.msra.mxu1 %v5162_v24 }
 0x43c   :  { %2579 = vmatprep.subr.bf16.mxu1 %v5167_v52 }
 0x43f   :  { %2580 = vmatpush1.bf16.msra.mxu1 %v5165_v25 }
 0x440   :  { %2581 = vmatprep.subr.bf16.mxu1 %v5170_v16 }
 0x442   :  { %4311 = vmatmul.mubr.msk.bf16.gmra.mrb[64].mxu1 %vm2231_vm4, %v6181_v0 }
 0x443   :  { %2475 = vmatprep.mubr.bf16.mxu1 %v5266_v1  ;;  %2582 = vmatpush1.bf16.msra.mxu1 %v5168_v63 }
 0x444   :  { %4337 = vmatprep.subr.msk.bf16.mxu1 %vm2247_vm3, %v4336_v30 }
 0x447   :  { %2584 = vmatpush1.bf16.msra.mxu1 %v2568_v28 }
 0x448   :  { %2753 = vmatprep.subr.bf16.mxu1 %v5175_v57 }
 0x44a   :  { %4312 = vmatmul.mubr.msk.bf16.gmra.mrb[68].mxu1 %vm2231_vm4, %v6201_v51 }
 0x44b   :  { %2485 = vmatprep.mubr.bf16.mxu1 %v5266_v1 }
 0x452   :  { %4313 = vmatmul.mubr.msk.bf16.gmra.mrb[72].mxu1 %vm2231_vm4, %v6215_v53 }
 0x453   :  { %2605 = vmatprep.mubr.bf16.mxu1 %v5266_v1 }
 0x45a   :  { %4338 = vmatmul.mubr.msk.bf16.vlgmr.msra.gmra.mrb[56].mxu1 %vm2231_vm4, %v6163_v29  ;;  %v5184_v29 = vld [vmem:[%s6727_s3 + $0x13c] ss:$8 sps:$4 sm:$0xff]  }
 0x45b   :  { %2754 = vmatpush1.bf16.msra.mxu1 %v5173_v44  ;;  %2615 = vmatprep.mubr.bf16.mxu1 %v5266_v1 }
 0x45c   :  { %2755 = vmatprep.subr.bf16.mxu1 %v5178_v46 }
 0x45f   :  { %2756 = vmatpush1.bf16.msra.mxu1 %v5176_v60 }
 0x460   :  { %2757 = vmatprep.subr.bf16.mxu1 %v5181_v31 }
 0x462   :  { %4339 = vmatmul.mubr.msk.bf16.gmra.mrb[60].mxu1 %vm2231_vm4, %v6181_v0 }
 0x463   :  { %2625 = vmatprep.mubr.bf16.mxu1 %v5266_v1  ;;  %2758 = vmatpush1.bf16.msra.mxu1 %v5179_v32 }
 0x464   :  { %2759 = vmatprep.subr.bf16.mxu1 %v5184_v29 }
 0x467   :  { %2760 = vmatpush1.bf16.msra.mxu1 %v5182_v33 }
 0x468   :  { %2761 = vmatprep.subr.bf16.mxu1 %v5187_v34 }
 0x46a   :  { %4340 = vmatmul.mubr.msk.bf16.gmra.mrb[64].mxu1 %vm2231_vm4, %v6201_v51 }
 0x46b   :  { %2635 = vmatprep.mubr.bf16.mxu1 %v5266_v1  ;;  %2762 = vmatpush1.bf16.msra.mxu1 %v5185_v38 }
 0x46c   :  { %4366 = vmatprep.subr.msk.bf16.mxu1 %vm2247_vm3, %v4365_v39 }
 0x46f   :  { %2764 = vmatpush1.bf16.msra.mxu1 %v2748_v42  ;;  %v5217_v42 = vld [vmem:[%s6728_s4 + $0x50] sm:$0xff]  }
 0x470   :  { %2933 = vmatprep.subr.bf16.mxu1 %v5192_v11 }
 0x472   :  { %4341 = vmatmul.mubr.msk.bf16.gmra.mrb[68].mxu1 %vm2231_vm4, %v6215_v53 }
 0x473   :  { %2645 = vmatprep.mubr.bf16.mxu1 %v5266_v1 }
 0x47a   :  { %4342 = vmatmul.mubr.msk.bf16.gmra.mrb[72].mxu1 %vm2231_vm4, %v6227_v43 }
 0x47b   :  { %2785 = vmatprep.mubr.bf16.mxu1 %v5266_v1 }
 0x482   :  { %4367 = vmatmul.mubr.msk.bf16.vlgmr.msra.gmra.mrb[56].mxu1 %vm2231_vm4, %v6176_v61  ;;  %v5201_v61 = vld [vmem:[%s6727_s3 + $0x194] ss:$8 sps:$4 sm:$0xff]  }
 0x483   :  { %2934 = vmatpush1.bf16.msra.mxu1 %v5190_v47  ;;  %2795 = vmatprep.mubr.bf16.mxu1 %v5266_v1 }
 0x484   :  { %2935 = vmatprep.subr.bf16.mxu1 %v5195_v50 }
 0x487   :  { %2936 = vmatpush1.bf16.msra.mxu1 %v5193_v54 }
 0x488   :  { %2937 = vmatprep.subr.bf16.mxu1 %v5198_v55 }
 0x48a   :  { %4368 = vmatmul.mubr.msk.bf16.gmra.mrb[60].mxu1 %vm2231_vm4, %v6198_v41  ;;  %v5202_v41 = vld [vmem:[%s6727_s3 + $0x1a0] ss:$8 sps:$4 sm:$0xff]  }
 0x48b   :  { %2805 = vmatprep.mubr.bf16.mxu1 %v5266_v1  ;;  %2938 = vmatpush1.bf16.msra.mxu1 %v5196_v58 }
 0x48c   :  { %2939 = vmatprep.subr.bf16.mxu1 %v5201_v61 }
 0x48f   :  { %2940 = vmatpush1.bf16.msra.mxu1 %v5199_v59  ;;  %v5218_v59 = vld [vmem:[%s6728_s4 + $0x58] sm:$0xff]  }
 0x490   :  { %2941 = vmatprep.subr.bf16.mxu1 %v5204_v62 }
 0x492   :  { %4369 = vmatmul.mubr.msk.bf16.gmra.mrb[64].mxu1 %vm2231_vm4, %v6212_v9  ;;  %v5207_v9 = vld [vmem:[%s6728_s4] sm:$0xff]  }
 0x493   :  { %2815 = vmatprep.mubr.bf16.mxu1 %v5266_v1  ;;  %2942 = vmatpush1.bf16.msra.mxu1 %v5202_v41 }
 0x494   :  { %4395 = vmatprep.subr.msk.bf16.mxu1 %vm2247_vm3, %v4394_v37 }
 0x497   :  { %2944 = vmatpush1.bf16.msra.mxu1 %v2928_v3 }
 0x498   :  { %3195 = vmatprep.subr.bf16.mxu1 %v5266_v1 }
 0x49a   :  { %4370 = vmatmul.mubr.msk.bf16.gmra.mrb[68].mxu1 %vm2231_vm4, %v6221_v27  ;;  %v5214_v27 = vld [vmem:[%s6728_s4 + $0x38] sm:$0xff]  }
 0x49b   :  { %2825 = vmatprep.mubr.bf16.mxu1 %v5266_v1 }
 0x4a2   :  { %4371 = vmatmul.mubr.msk.bf16.gmra.mrb[72].mxu1 %vm2231_vm4, %v2688_v20 }
 0x4a3   :  { %2965 = vmatprep.mubr.bf16.mxu1 %v5266_v1 }
 0x4aa   :  { %4396 = vmatmul.mubr.msk.bf16.vlgmr.msra.gmra.mrb[56].mxu1 %vm2231_vm4, %v6181_v0  ;;  %v5210_v0 = vld [vmem:[%s6728_s4 + $0x18] sm:$0xff]  }
 0x4ab   :  { %2975 = vmatprep.mubr.bf16.mxu1 %v5266_v1  ;;  %3196 = vmatpush1.bf16.msra.mxu1 %v5207_v9 }
 0x4ac   :  { %3197 = vmatprep.subr.bf16.mxu1 %v5266_v1 }
 0x4af   :  { %3198 = vmatpush1.bf16.msra.mxu1 %v5208_v5  ;;  %v5219_v5 = vld [vmem:[%s6728_s4 + $0x60] sm:$0xff]  }
 0x4b0   :  { %3199 = vmatprep.subr.bf16.mxu1 %v5266_v1 }
 0x4b2   :  { %4397 = vmatmul.mubr.msk.bf16.gmra.mrb[60].mxu1 %vm2231_vm4, %v6201_v51  ;;  %v5212_v51 = vld [vmem:[%s6728_s4 + $0x28] sm:$0xff]  }
 0x4b3   :  { %2985 = vmatprep.mubr.bf16.mxu1 %v5266_v1  ;;  %3200 = vmatpush1.bf16.msra.mxu1 %v5209_v4 }
 0x4b4   :  { %3201 = vmatprep.subr.bf16.mxu1 %v5266_v1 }
 0x4b7   :  { %3202 = vmatpush1.bf16.msra.mxu1 %v5210_v0 }
 0x4b8   :  { %3203 = vmatprep.subr.bf16.mxu1 %v5266_v1 }
 0x4ba   :  { %4398 = vmatmul.mubr.msk.bf16.gmra.mrb[64].mxu1 %vm2231_vm4, %v6215_v53  ;;  %v5213_v53 = vld [vmem:[%s6728_s4 + $0x30] sm:$0xff]  }
 0x4bb   :  { %2995 = vmatprep.mubr.bf16.mxu1 %v5266_v1  ;;  %3204 = vmatpush1.bf16.msra.mxu1 %v5211_v19 }
 0x4bc   :  { %3205 = vmatprep.subr.bf16.mxu1 %v5266_v1 }
 0x4bf   :  { %3206 = vmatpush1.bf16.msra.mxu1 %v5212_v51 }
 0x4c0   :  { %3207 = vmatprep.subr.bf16.mxu1 %v5266_v1 }
 0x4c2   :  { %4399 = vmatmul.mubr.msk.bf16.gmra.mrb[68].mxu1 %vm2231_vm4, %v6227_v43  ;;  %v4401_v43 = vld [vmem:[%s6726_s8 + $0x1] ss:$8 sm:$0x3] }
 0x4c3   :  { %3005 = vmatprep.mubr.bf16.mxu1 %v5266_v1  ;;  %3208 = vmatpush1.bf16.msra.mxu1 %v5213_v53  ;;  %v6450_v48 = vrot.slane %v4401_v43, %v1591_v12  ;;  %v6454_v56 = vrot.slane %v4401_v43, %v1595_v15 }
 0x4c4   :  { %3209 = vmatprep.subr.bf16.mxu1 %v5266_v1 }
 0x4c7   :  { %3210 = vmatpush1.bf16.msra.mxu1 %v5214_v27 }
 0x4c8   :  { %3211 = vmatprep.subr.bf16.mxu1 %v5266_v1 }
 0x4ca   :  { %4400 = vmatmul.mubr.msk.bf16.gmra.mrb[72].mxu1 %vm2231_vm4, %v6245_v23 }
 0x4cb   :  { %3212 = vmatpush1.bf16.msra.mxu1 %v5215_v36 }
 0x4cc   :  { %3213 = vmatprep.subr.bf16.mxu1 %v5266_v1 }
 0x4cf   :  { %3214 = vmatpush1.bf16.msra.mxu1 %v5216_v7  ;;  %v5220_v7 = vld [vmem:[%s6728_s4 + $0x68] sm:$0xff]  }
 0x4d0   :  { %3332 = vmatprep.subr.bf16.mxu1 %v5266_v1 }
 0x57d   :  { %v2967_v10 = vpop.f32.mrb[56].mxu1 }
 0x57e   :  { %v3049_v14 = vadd.f32 %v6450_v48, %v2967_v10  ;;  %v2969_v13 = vpop.f32.mrb[57].mxu1 }
 0x57f   :  { %v3050_v20 = vadd.f32 %v6454_v56, %v2969_v13  ;;  %v2971_v21 = vpop.f32.mrb[58].mxu1 }
 0x580   :  { %v3051_v22 = vadd.f32 %v6450_v48, %v2971_v21  ;;  %v2973_v18 = vpop.f32.mrb[59].mxu1  ;;  %v3069_v49 = vmax.f32 %v3049_v14, 0.0 }
 0x581   :  { %v3052_v23 = vadd.f32 %v6454_v56, %v2973_v18  ;;  %v3070_v12 = vmax.f32 %v3050_v20, 0.0 }
 0x582   :  { %v3071_v2 = vmax.f32 %v3051_v22, 0.0 }
 0x583   :  { %v3072_v24 = vmax.f32 %v3052_v23, 0.0 }
 0x584   :  { %v3089_v52 = vmax.f32 %v3069_v49, %v3071_v2  ;;  %v5221_v49 = vld [vmem:[%s6728_s4 + $0x70] sm:$0xff]  }
 0x585   :  { %v3090_v8 = vmax.f32 %v3070_v12, %v3072_v24  ;;  %v2977_v15 = vpop.f32.mrb[60].mxu1 }
 0x586   :  { %v3053_v25 = vadd.f32 %v6450_v48, %v2977_v15  ;;  %v2979_v16 = vpop.f32.mrb[61].mxu1 }
 0x587   :  { %v3054_v17 = vadd.f32 %v6454_v56, %v2979_v16  ;;  %v2981_v63 = vpop.f32.mrb[62].mxu1  ;;  %v5222_v16 = vld [vmem:[%s6728_s4 + $0x78] sm:$0xff]  }
 0x588   :  { %v3055_v30 = vadd.f32 %v6450_v48, %v2981_v63  ;;  %v2983_v26 = vpop.f32.mrb[63].mxu1  ;;  %v3073_v57 = vmax.f32 %v3053_v25, 0.0 }
 0x589   :  { %v3056_v28 = vadd.f32 %v6454_v56, %v2983_v26  ;;  %v3074_v46 = vmax.f32 %v3054_v17, 0.0  ;;  %v5224_v26 = vld [vmem:[%s6728_s4 + $0x88] sm:$0xff]  }
 0x58a   :  { %v3075_v44 = vmax.f32 %v3055_v30, 0.0 }
 0x58b   :  { %v3076_v60 = vmax.f32 %v3056_v28, 0.0  ;;  %v5225_v28 = vld [vmem:[%s6728_s4 + $0x90] sm:$0xff]  }
 0x58c   :  { %v3091_v31 = vmax.f32 %v3073_v57, %v3075_v44  ;;  %v5226_v57 = vld [vmem:[%s6728_s4 + $0x98] sm:$0xff]   ;;  %v5267_v44 = vmov 0.0  }
 0x58d   :  { %v3092_v32 = vmax.f32 %v3074_v46, %v3076_v60  ;;  %v2987_v29 = vpop.f32.mrb[64].mxu1  ;;  %v5227_v46 = vld [vmem:[%s6729_s5] sm:$0xff]   ;;  %v5229_v60 = vld [vmem:[%s6729_s5 + $0x10] sm:$0xff]  }
 0x58e   :  { %v6464_v33 = vpack.c.bf16 %v3091_v31, %v3089_v52  ;;  %v3057_v34 = vadd.f32 %v6450_v48, %v2987_v29  ;;  %v2989_v35 = vpop.f32.mrb[65].mxu1  ;;  %v5230_v31 = vld [vmem:[%s6729_s5 + $0x18] sm:$0xff]  }
 0x58f   :  { %v6467_v38 = vpack.c.bf16 %v3092_v32, %v3090_v8  ;;  %v3058_v39 = vadd.f32 %v6454_v56, %v2989_v35  ;;  %v2991_v40 = vpop.f32.mrb[66].mxu1  ;;  %v5231_v32 = vld [vmem:[%s6729_s5 + $0x20] sm:$0xff]  }
 0x590   :  { %v3059_v11 = vadd.f32 %v6450_v48, %v2991_v40  ;;  %v2993_v47 = vpop.f32.mrb[67].mxu1  ;;  %v3077_v54 = vmax.f32 %v3057_v34, 0.0 }
 0x591   :  { %v3060_v50 = vadd.f32 %v6454_v56, %v2993_v47  ;;  %4412 = vmatprep.mubr.msk.bf16.mxu1 %vm3185_vm5, %v6467_v38  ;;  %v3078_v58 = vmax.f32 %v3058_v39, 0.0 }
 0x592   :  { %v3079_v55 = vmax.f32 %v3059_v11, 0.0  ;;  %3228 = vmatmul.mubr.bf16.vlgmr.msra.gmra.mrb[76].mxu1 %v6464_v33 }
 0x593   :  { %v3080_v61 = vmax.f32 %v3060_v50, 0.0  ;;  %3333 = vmatpush1.bf16.msra.mxu1 %v5217_v42 }
 0x594   :  { %v3093_v62 = vmax.f32 %v3077_v54, %v3079_v55  ;;  %3334 = vmatprep.subr.bf16.mxu1 %v5266_v1 }
 0x595   :  { %v3094_v6 = vmax.f32 %v3078_v58, %v3080_v61  ;;  %v2997_v41 = vpop.f32.mrb[68].mxu1 }
 0x596   :  { %v3061_v37 = vadd.f32 %v6450_v48, %v2997_v41  ;;  %v2999_v45 = vpop.f32.mrb[69].mxu1 }
 0x597   :  { %v3062_v3 = vadd.f32 %v6454_v56, %v2999_v45  ;;  %3335 = vmatpush1.bf16.msra.mxu1 %v5218_v59  ;;  %v3001_v9 = vpop.f32.mrb[70].mxu1  ;;  %v5233_v45 = vld [vmem:[%s6729_s5 + $0x30] sm:$0xff]  }
 0x598   :  { %v3063_v4 = vadd.f32 %v6450_v48, %v3001_v9  ;;  %v3003_v0 = vpop.f32.mrb[71].mxu1  ;;  %3336 = vmatprep.subr.bf16.mxu1 %v5266_v1  ;;  %v3081_v51 = vmax.f32 %v3061_v37, 0.0 }
 0x599   :  { %v3064_v19 = vadd.f32 %v6454_v56, %v3003_v0  ;;  %v3082_v27 = vmax.f32 %v3062_v3, 0.0  ;;  %v5234_v0 = vld [vmem:[%s6729_s5 + $0x38] sm:$0xff]  }
 0x59a   :  { %v3083_v53 = vmax.f32 %v3063_v4, 0.0 }
 0x59b   :  { %v3084_v36 = vmax.f32 %v3064_v19, 0.0  ;;  %3337 = vmatpush1.bf16.msra.mxu1 %v5219_v5 }
 0x59c   :  { %v3095_v43 = vmax.f32 %v3081_v51, %v3083_v53  ;;  %3338 = vmatprep.subr.bf16.mxu1 %v5266_v1  ;;  %v5235_v53 = vld [vmem:[%s6729_s5 + $0x40] sm:$0xff]  }
 0x59d   :  { %v3096_v10 = vmax.f32 %v3082_v27, %v3084_v36  ;;  %v3007_v14 = vpop.f32.mrb[72].mxu1 }
 0x59e   :  { %v3065_v13 = vadd.f32 %v6450_v48, %v3007_v14  ;;  %v3009_v20 = vpop.f32.mrb[73].mxu1  ;;  %v3121_v21 = vpack.c.bf16 %v3095_v43, %v3093_v62  ;;  %v5232_v62 = vld [vmem:[%s6729_s5 + $0x28] sm:$0xff]  }
 0x59f   :  { %v3122_v22 = vpack.c.bf16 %v3096_v10, %v3094_v6  ;;  %v3066_v18 = vadd.f32 %v6454_v56, %v3009_v20  ;;  %3339 = vmatpush1.bf16.msra.mxu1 %v5220_v7  ;;  %v3011_v23 = vpop.f32.mrb[74].mxu1  ;;  %v5236_v10 = vld [vmem:[%s6729_s5 + $0x48] sm:$0xff]  }
 0x5a0   :  { %v3067_v2 = vadd.f32 %v6450_v48, %v3011_v23  ;;  %v3013_v12 = vpop.f32.mrb[75].mxu1  ;;  %3340 = vmatprep.subr.bf16.mxu1 %v5266_v1  ;;  %v3085_v52 = vmax.f32 %v3065_v13, 0.0  ;;  %v5237_v13 = vld [vmem:[%s6729_s5 + $0x50] sm:$0xff]  }
 0x5a1   :  { %v3068_v24 = vadd.f32 %v6454_v56, %v3013_v12  ;;  %4413 = vmatprep.mubr.msk.bf16.mxu1 %vm3185_vm5, %v3122_v22  ;;  %v3086_v15 = vmax.f32 %v3066_v18, 0.0  ;;  %v5223_v56 = vld [vmem:[%s6728_s4 + $0x80] sm:$0xff]   ;;  %v5240_v18 = vld [vmem:[%s6729_s5 + $0x68] sm:$0xff]   ;;  %v5241_v23 = vld [vmem:[%s6729_s5 + $0x70] sm:$0xff]  }
 0x5a2   :  { %v3087_v8 = vmax.f32 %v3067_v2, 0.0  ;;  %3236 = vmatmul.mubr.bf16.gmra.mrb[80].mxu1 %v3121_v21  ;;  %v5243_v12 = vld [vmem:[%s6729_s5 + $0x80] sm:$0xff]  }
 0x5a3   :  { %v3088_v25 = vmax.f32 %v3068_v24, 0.0  ;;  %3341 = vmatpush1.bf16.msra.mxu1 %v5221_v49  ;;  %v5242_v49 = vld [vmem:[%s6729_s5 + $0x78] sm:$0xff]   ;;  %v5244_v24 = vld [vmem:[%s6729_s5 + $0x88] sm:$0xff]  }
 0x5a4   :  { %v3097_v17 = vmax.f32 %v3085_v52, %v3087_v8  ;;  %3342 = vmatprep.subr.bf16.mxu1 %v5266_v1  ;;  %v5245_v52 = vld [vmem:[%s6729_s5 + $0x90] sm:$0xff]   ;;  %v5246_v8 = vld [vmem:[%s6729_s5 + $0x98] sm:$0xff]  }
 0x5a5   :  { %v3098_v48 = vmax.f32 %v3086_v15, %v3088_v25  ;;  %v5247_v15 = vld [vmem:[%s6729_s5 + $0xa0] sm:$0xff]  }
 0x5a6   :  { %v3123_v30 = vpack.c.bf16 %v3097_v17, %v3097_v17  ;;  %v5249_v17 = vld [vmem:[%s6729_s5 + $0xb0] sm:$0xff]  }
 0x5a7   :  { %v3124_v63 = vpack.c.bf16 %v3098_v48, %v3098_v48  ;;  %3343 = vmatpush1.bf16.msra.mxu1 %v5222_v16  ;;  %v5248_v16 = vld [vmem:[%s6729_s5 + $0xa8] sm:$0xff]   ;;  %v5250_v48 = vld [vmem:[%s6729_s5 + $0xb8] sm:$0xff]  }
 0x5a8   :  { %3344 = vmatprep.subr.bf16.mxu1 %v5266_v1 }
 0x5a9   :  { %4414 = vmatprep.mubr.msk.bf16.mxu1 %vm3185_vm5, %v3124_v63 }
 0x5aa   :  { %3244 = vmatmul.mubr.bf16.gmra.mrb[84].mxu1 %v3123_v30 }
 0x5ab   :  { %3345 = vmatpush1.bf16.msra.mxu1 %v5223_v56  ;;  %4445 = vmatprep.mubr.msk.bf16.mxu1 %vm3185_vm5, %v6467_v38  ;;  %v5252_v56 = vld [vmem:[%s6730_s6] sm:$0xff]  }
 0x5ac   :  { %3346 = vmatprep.subr.bf16.mxu1 %v5266_v1 }
 0x5af   :  { %3347 = vmatpush1.bf16.msra.mxu1 %v5224_v26  ;;  %v5253_v26 = vld [vmem:[%s6730_s6 + $0x8] sm:$0xff]  }
 0x5b0   :  { %3348 = vmatprep.subr.bf16.mxu1 %v5266_v1 }
 0x5b3   :  { %3349 = vmatpush1.bf16.msra.mxu1 %v5225_v28  ;;  %v5254_v28 = vld [vmem:[%s6730_s6 + $0x10] sm:$0xff]  }
 0x5b4   :  { %3350 = vmatprep.subr.bf16.mxu1 %v5266_v1  ;;  %v5228_v1 = vld [vmem:[%s6729_s5 + $0x8] sm:$0xff]  }
 0x5b7   :  { %3351 = vmatpush1.bf16.msra.mxu1 %v5226_v57  ;;  %v5255_v57 = vld [vmem:[%s6730_s6 + $0x18] sm:$0xff]  }
 0x5b8   :  { %4580 = vmatprep.subr.bf16.mxu1 %v5267_v44 }
 0x5ba   :  { %3365 = vmatmul.mubr.bf16.vlgmr.msra.gmra.mrb[88].mxu1 %v6464_v33 }
 0x5bb   :  { %4446 = vmatprep.mubr.msk.bf16.mxu1 %vm3185_vm5, %v3122_v22  ;;  %4581 = vmatpush3.bf16.msra.mxu1 %v5227_v46  ;;  %v5239_v22 = vld [vmem:[%s6729_s5 + $0x60] sm:$0xff]  }
 0x5bc   :  { %4582 = vmatprep.subr.bf16.mxu1 %v5267_v44  ;;  %v5256_v46 = vld [vmem:[%s6730_s6 + $0x20] sm:$0xff]  }
 0x5bf   :  { %4583 = vmatpush3.bf16.msra.mxu1 %v5228_v1  ;;  %v5257_v1 = vld [vmem:[%s6730_s6 + $0x28] sm:$0xff]  }
 0x5c0   :  { %4584 = vmatprep.subr.bf16.mxu1 %v5267_v44 }
 0x5c2   :  { %3373 = vmatmul.mubr.bf16.gmra.mrb[92].mxu1 %v3121_v21  ;;  %v5238_v21 = vld [vmem:[%s6729_s5 + $0x58] sm:$0xff]  }
 0x5c3   :  { %4447 = vmatprep.mubr.msk.bf16.mxu1 %vm3185_vm5, %v3124_v63  ;;  %4585 = vmatpush3.bf16.msra.mxu1 %v5229_v60  ;;  %v5251_v63 = vld [vmem:[%s6729_s5 + $0xc0] sm:$0xff]   ;;  %v5258_v60 = vld [vmem:[%s6730_s6 + $0x30] sm:$0xff]  }
 0x5c4   :  { %4586 = vmatprep.subr.bf16.mxu1 %v5267_v44 }
 0x5c7   :  { %4587 = vmatpush3.bf16.msra.mxu1 %v5230_v31  ;;  %v5259_v31 = vld [vmem:[%s6730_s6 + $0x38] ss:$0 sps:$4 sm:$0xff]  }
 0x5c8   :  { %4588 = vmatprep.subr.bf16.mxu1 %v5267_v44 }
 0x5ca   :  { %3381 = vmatmul.mubr.bf16.gmra.mrb[96].mxu1 %v3123_v30 }
 0x5cb   :  { %4589 = vmatpush3.bf16.msra.mxu1 %v5231_v32  ;;  %4590 = vmatprep.mubr.msk.bf16.mxu1 %vm5268_vm6, %v5267_v44  ;;  %v3892_v32 = vsel %vm1859_vm1, %v5259_v31, 0 }
 0x5cc   :  { %4594 = vmatprep.subr.bf16.mxu1 %v5267_v44 }
 0x665   :  { %v3229_v29 = vpop.f32.mrb[76].mxu1 }
 0x666   :  { %v3231_v33 = vpop.f32.mrb[77].mxu1 }
 0x667   :  { %v3232_v34 = vpop.f32.mrb[78].mxu1 }
 0x668   :  { %v3234_v35 = vpop.f32.mrb[79].mxu1 }
 0x675   :  { %v3237_v38 = vpop.f32.mrb[80].mxu1 }
 0x676   :  { %v3239_v39 = vpop.f32.mrb[81].mxu1 }
 0x677   :  { %v3240_v40 = vpop.f32.mrb[82].mxu1 }
 0x678   :  { %v3242_v42 = vpop.f32.mrb[83].mxu1 }
 0x679   :  { %v5260_v42 = vld [vmem:[%s6731_s7] sm:$0xff]  }
 0x67d   :  { %v3245_v11 = vpop.f32.mrb[84].mxu1 }
 0x67e   :  { %v3247_v47 = vpop.f32.mrb[85].mxu1 }
 0x67f   :  { %v3248_v50 = vpop.f32.mrb[86].mxu1  ;;  %v5261_v47 = vld [vmem:[%s6731_s7 + $0x8] sm:$0xff]  }
 0x680   :  { %v3249_v54 = vpop.f32.mrb[87].mxu1  ;;  %v5262_v50 = vld [vmem:[%s6731_s7 + $0x10] sm:$0xff]  }
 0x681   :  { %v5263_v54 = vld [vmem:[%s6731_s7 + $0x18] sm:$0xff]  }
 0x68d   :  { %v3366_v55 = vpop.f32.mrb[88].mxu1 }
 0x68e   :  { %v3388_v58 = vmax.f32 %v3229_v29, %v3366_v55  ;;  %v3368_v61 = vpop.f32.mrb[89].mxu1  ;;  %v3393_v29 = vld [vmem:[%s6726_s8 + $0x2] ss:$0 sm:$0xff] }
 0x68f   :  { %v3369_v59 = vpop.f32.mrb[90].mxu1  ;;  %v5264_v55 = vld [vmem:[%s6731_s7 + $0x20] sm:$0xff]  }
 0x690   :  { %v3404_v6 = vpack.c.bf16 %v3388_v58, %v3388_v58  ;;  %v3389_v41 = vmax.f32 %v3232_v34, %v3369_v59  ;;  %v3371_v37 = vpop.f32.mrb[91].mxu1  ;;  %v5265_v58 = vld [vmem:[%s6731_s7 + $0x28] ss:$0 sps:$4 sm:$0x33]   ;;  %v3841_v59 = vld [vmem:[%s6726_s8 + $0x3] ss:$0 sm:$0xff] }
 0x691   :  { %v3985_v61 = vsel %vm2247_vm3, %v5265_v58, 0 }
 0x692   :  { %4591 = vmatmul.mubr.msk.bf16.vlgmr.msra.gmra.mrb[100].mxu1 %vm3435_vm7, %v3404_v6  ;;  %v3491_v20 = vpack.c.bf16 %v3389_v41, %v3389_v41 }
 0x693   :  { %4595 = vmatpush3.bf16.msra.mxu1 %v5232_v62  ;;  %4604 = vmatprep.mubr.msk.bf16.mxu1 %vm5268_vm6, %v5267_v44 }
 0x694   :  { %4596 = vmatprep.subr.bf16.mxu1 %v5267_v44 }
 0x695   :  { %v3374_v3 = vpop.f32.mrb[92].mxu1 }
 0x696   :  { %v3390_v9 = vmax.f32 %v3237_v38, %v3374_v3  ;;  %v3376_v5 = vpop.f32.mrb[93].mxu1 }
 0x697   :  { %4597 = vmatpush3.bf16.msra.mxu1 %v5233_v45  ;;  %v3377_v4 = vpop.f32.mrb[94].mxu1 }
 0x698   :  { %v3391_v19 = vmax.f32 %v3240_v40, %v3377_v4  ;;  %v3379_v51 = vpop.f32.mrb[95].mxu1  ;;  %4598 = vmatprep.subr.bf16.mxu1 %v5267_v44  ;;  %v3577_v2 = vpack.c.bf16 %v3390_v9, %v3390_v9 }
 0x69a   :  { %v3663_v25 = vpack.c.bf16 %v3391_v19, %v3391_v19 }
 0x69b   :  { %4599 = vmatpush3.bf16.msra.mxu1 %v5234_v0 }
 0x69c   :  { %4600 = vmatprep.subr.bf16.mxu1 %v5267_v44 }
 0x69d   :  { %v3382_v27 = vpop.f32.mrb[96].mxu1 }
 0x69e   :  { %v6570_v36 = vmax.f32 %v3245_v11, %v3382_v27  ;;  %v3384_v7 = vpop.f32.mrb[97].mxu1 }
 0x69f   :  { %4601 = vmatpush3.bf16.msra.mxu1 %v5235_v53  ;;  %v3385_v43 = vpop.f32.mrb[98].mxu1 }
 0x6a0   :  { %v3386_v14 = vpop.f32.mrb[99].mxu1  ;;  %4602 = vmatprep.subr.bf16.mxu1 %v5267_v44  ;;  %v3749_v30 = vpack.c.bf16 %v6570_v36, %v6570_v36 }
 0x6a3   :  { %4603 = vmatpush3.bf16.msra.mxu1 %v5236_v10 }
 0x6a4   :  { %4608 = vmatprep.subr.bf16.mxu1 %v5267_v44 }
 0x6a6   :  { %4605 = vmatmul.mubr.msk.bf16.vlgmr.msra.gmra.mrb[100].mxu1 %vm3435_vm7, %v3491_v20 }
 0x6a7   :  { %4609 = vmatpush3.bf16.msra.mxu1 %v5237_v13  ;;  %4618 = vmatprep.mubr.msk.bf16.mxu1 %vm5268_vm6, %v5267_v44 }
 0x6a8   :  { %4610 = vmatprep.subr.bf16.mxu1 %v5267_v44 }
 0x6ab   :  { %4611 = vmatpush3.bf16.msra.mxu1 %v5238_v21 }
 0x6ac   :  { %4612 = vmatprep.subr.bf16.mxu1 %v5267_v44 }
 0x6af   :  { %4613 = vmatpush3.bf16.msra.mxu1 %v5239_v22 }
 0x6b0   :  { %4614 = vmatprep.subr.bf16.mxu1 %v5267_v44 }
 0x6b3   :  { %4615 = vmatpush3.bf16.msra.mxu1 %v5240_v18 }
 0x6b4   :  { %4616 = vmatprep.subr.bf16.mxu1 %v5267_v44 }
 0x6b7   :  { %4617 = vmatpush3.bf16.msra.mxu1 %v5241_v23 }
 0x6b8   :  { %4622 = vmatprep.subr.bf16.mxu1 %v5267_v44 }
 0x6ba   :  { %4619 = vmatmul.mubr.msk.bf16.vlgmr.msra.gmra.mrb[100].mxu1 %vm3435_vm7, %v3577_v2 }
 0x6bb   :  { %4623 = vmatpush3.bf16.msra.mxu1 %v5242_v49  ;;  %4632 = vmatprep.mubr.msk.bf16.mxu1 %vm5268_vm6, %v5267_v44 }
 0x6bc   :  { %4624 = vmatprep.subr.bf16.mxu1 %v5267_v44 }
 0x6bf   :  { %4625 = vmatpush3.bf16.msra.mxu1 %v5243_v12 }
 0x6c0   :  { %4626 = vmatprep.subr.bf16.mxu1 %v5267_v44 }
 0x6c3   :  { %4627 = vmatpush3.bf16.msra.mxu1 %v5244_v24 }
 0x6c4   :  { %4628 = vmatprep.subr.bf16.mxu1 %v5267_v44 }
 0x6c7   :  { %4629 = vmatpush3.bf16.msra.mxu1 %v5245_v52 }
 0x6c8   :  { %4630 = vmatprep.subr.bf16.mxu1 %v5267_v44 }
 0x6cb   :  { %4631 = vmatpush3.bf16.msra.mxu1 %v5246_v8 }
 0x6cc   :  { %4636 = vmatprep.subr.bf16.mxu1 %v5267_v44 }
 0x6ce   :  { %4633 = vmatmul.mubr.msk.bf16.vlgmr.msra.gmra.mrb[100].mxu1 %vm3435_vm7, %v3663_v25 }
 0x6cf   :  { %4637 = vmatpush3.bf16.msra.mxu1 %v5247_v15  ;;  %4646 = vmatprep.mubr.msk.bf16.mxu1 %vm5268_vm6, %v5267_v44 }
 0x6d0   :  { %4638 = vmatprep.subr.bf16.mxu1 %v5267_v44 }
 0x6d3   :  { %4639 = vmatpush3.bf16.msra.mxu1 %v5248_v16 }
 0x6d4   :  { %4640 = vmatprep.subr.bf16.mxu1 %v5267_v44 }
 0x6d7   :  { %4641 = vmatpush3.bf16.msra.mxu1 %v5249_v17 }
 0x6d8   :  { %4642 = vmatprep.subr.bf16.mxu1 %v5267_v44 }
 0x6db   :  { %4643 = vmatpush3.bf16.msra.mxu1 %v5250_v48 }
 0x6dc   :  { %4644 = vmatprep.subr.bf16.mxu1 %v5267_v44 }
 0x6df   :  { %4645 = vmatpush3.bf16.msra.mxu1 %v5251_v63 }
 0x6e0   :  { %4650 = vmatprep.subr.bf16.mxu1 %v5267_v44 }
 0x6e2   :  { %4647 = vmatmul.mubr.msk.bf16.vlgmr.msra.gmra.mrb[100].mxu1 %vm3435_vm7, %v3749_v30 }
 0x6e3   :  { %4651 = vmatpush3.bf16.msra.mxu1 %v5252_v56  ;;  %4666 = vmatprep.mubr.msk.bf16.mxu1 %vm5268_vm6, %v5267_v44 }
 0x6e4   :  { %4652 = vmatprep.subr.bf16.mxu1 %v5267_v44 }
 0x6e7   :  { %4653 = vmatpush3.bf16.msra.mxu1 %v5253_v26 }
 0x6e8   :  { %4654 = vmatprep.subr.bf16.mxu1 %v5267_v44 }
 0x6eb   :  { %4655 = vmatpush3.bf16.msra.mxu1 %v5254_v28 }
 0x6ec   :  { %4656 = vmatprep.subr.bf16.mxu1 %v5267_v44 }
 0x6ef   :  { %4657 = vmatpush3.bf16.msra.mxu1 %v5255_v57 }
 0x6f0   :  { %4658 = vmatprep.subr.bf16.mxu1 %v5267_v44 }
 0x6f3   :  { %4659 = vmatpush3.bf16.msra.mxu1 %v5256_v46 }
 0x6f4   :  { %4660 = vmatprep.subr.bf16.mxu1 %v5267_v44 }
 0x6f7   :  { %4661 = vmatpush3.bf16.msra.mxu1 %v5257_v1 }
 0x6f8   :  { %4662 = vmatprep.subr.bf16.mxu1 %v5267_v44 }
 0x6fb   :  { %4663 = vmatpush3.bf16.msra.mxu1 %v5258_v60 }
 0x6fc   :  { %4664 = vmatprep.subr.bf16.mxu1 %v5267_v44 }
 0x6ff   :  { %4665 = vmatpush3.bf16.msra.mxu1 %v3892_v32 }
 0x700   :  { %4670 = vmatprep.subr.bf16.mxu1 %v5267_v44 }
 0x7b5   :  { %v3817_v33 = vpop.f32.mrb[100].mxu1 }
 0x7b6   :  { %v4686_v34 = vadd.f32 %v3817_v33, %v3393_v29  ;;  %v4648_v35 = vpop.f32.mrb[101].mxu1 }
 0x7b7   :  { %v3820_v38 = vpop.f32.mrb[102].mxu1 }
 0x7b8   :  { %v3824_v39 = vmax.f32 %v4686_v34, 0.0  ;;  %v4649_v40 = vpop.f32.mrb[103].mxu1 }
 0x7ba   :  { %v3840_v11 = vpack.c.bf16 %v3824_v39, %v3824_v39 }
 0x7bc   :  { %4667 = vmatmul.mubr.msk.bf16.vlgmr.msra.gmra.mrb[104].mxu1 %vm3887_vm8, %v3840_v11 }
 0x7bd   :  { %4671 = vmatpush3.bf16.msra.mxu1 %v5260_v42  ;;  %4682 = vmatprep.mubr.msk.bf16.mxu1 %vm5268_vm6, %v5267_v44 }
 0x7be   :  { %4672 = vmatprep.subr.bf16.mxu1 %v5267_v44 }
 0x7c1   :  { %4673 = vmatpush3.bf16.msra.mxu1 %v5261_v47 }
 0x7c2   :  { %4674 = vmatprep.subr.bf16.mxu1 %v5267_v44 }
 0x7c5   :  { %4675 = vmatpush3.bf16.msra.mxu1 %v5262_v50 }
 0x7c6   :  { %4676 = vmatprep.subr.bf16.mxu1 %v5267_v44 }
 0x7c9   :  { %4677 = vmatpush3.bf16.msra.mxu1 %v5263_v54 }
 0x7ca   :  { %4678 = vmatprep.subr.bf16.mxu1 %v5267_v44 }
 0x7cd   :  { %4679 = vmatpush3.bf16.msra.mxu1 %v5264_v55 }
 0x7ce   :  { %4680 = vmatprep.subr.bf16.mxu1 %v5267_v44  ;;  %v3947_v44 = vld [vmem:[%s6726_s8 + $0x4] ss:$0 sm:$0xff] }
 0x7d1   :  { %4681 = vmatpush3.bf16.msra.mxu1 %v3985_v61 }
 0x88f   :  { %v3928_v62 = vpop.f32.mrb[104].mxu1 }
 0x890   :  { %v3929_v6 = vadd.f32 %v3928_v62, %v3841_v59  ;;  %v4668_v41 = vpop.f32.mrb[105].mxu1 }
 0x891   :  { %v3931_v37 = vpop.f32.mrb[106].mxu1 }
 0x892   :  { %v3934_v45 = vmax.f32 %v3929_v6, 0.0  ;;  %v4669_v3 = vpop.f32.mrb[107].mxu1 }
 0x894   :  { %v3946_v9 = vpack.c.bf16 %v3934_v45, %v3934_v45 }
 0x896   :  { %4683 = vmatmul.mubr.msk.bf16.vlgmr.msra.gmra.mrb[108].mxu1 %vm2231_vm4, %v3946_v9 }
 0x969   :  { %v4021_v5 = vpop.f32.mrb[108].mxu1 }
 0x96a   :  { %v4022_v4 = vadd.f32 %v4021_v5, %v3947_v44  ;;  %v4684_v0 = vpop.f32.mrb[109].mxu1 }
 0x96b   :  { %v4024_v19 = vpop.f32.mrb[110].mxu1 }
 0x96c   :  { %4027 = vst [vmem:[%s6732_s9] sm:$0xff] %v4022_v4  ;;  %v4685_v51 = vpop.f32.mrb[111].mxu1 }

</bundles_post_ra>
